<compile_context>
chip_gen: v7x
topology: tpu7x:2x2x1
jax: 0.10.0
libtpu: 0.0.40
codegen_flags: <defaults>
</compile_context>

<pallas_src>
import functools
import math
from functools import reduce
from operator import mul

import jax
import jax.numpy as jnp
from jax.experimental import pallas as pl
from jax.experimental.pallas import tpu as pltpu


# ----------------------------------------------------------------------------
# In-kernel math helpers (plain jnp on loaded values)
# ----------------------------------------------------------------------------

def _layernorm(x, g, b, eps=1e-6):
    # timm ViT uses LayerNorm(eps=1e-6); keep reduction math in f32.
    x = x.astype(jnp.float32)
    mu = jnp.mean(x, axis=-1, keepdims=True)
    xc = x - mu
    var = jnp.mean(xc * xc, axis=-1, keepdims=True)
    return xc * jax.lax.rsqrt(var + eps) * g + b


def _erf(x):
    # Abramowitz & Stegun 7.1.26 (|err| <= 1.5e-7): erf-based "exact" GELU
    # matching PyTorch nn.GELU default, built only from VPU/EUP ops.
    a1, a2, a3, a4, a5 = 0.254829592, -0.284496736, 1.421413741, -1.453152027, 1.061405429
    p = 0.3275911
    sgn = jnp.where(x >= 0.0, 1.0, -1.0)
    ax = jnp.abs(x)
    t = 1.0 / (1.0 + p * ax)
    poly = ((((a5 * t + a4) * t + a3) * t + a2) * t + a1) * t
    return sgn * (1.0 - poly * jnp.exp(-ax * ax))


def _gelu_exact(x):
    return 0.5 * x * (1.0 + _erf(x * (1.0 / math.sqrt(2.0))))


def _mm(x_f32, w_bf16, b_f32):
    # bf16 operands on the MXU, f32 accumulate, f32 bias add.
    return jnp.dot(x_f32.astype(jnp.bfloat16), w_bf16,
                   preferred_element_type=jnp.float32) + b_f32


# ----------------------------------------------------------------------------
# Fused kernel: embed (d==0) -> prompt splice + block (every d) -> head (last d)
# ----------------------------------------------------------------------------

_BLOCK_PARAM_ORDER = ("ln1_g", "ln1_b", "qkv_w", "qkv_b", "proj_w", "proj_b",
                      "ln2_g", "ln2_b", "fc1_w", "fc1_b", "fc2_w", "fc2_b")


def _fused_kernel(t_base, t_valid, heads, dh,
                  xp_ref, pw_ref, pb_ref, cls_ref, pos_ref, pr_ref,
                  ln1g, ln1b, qkvw, qkvb, projw, projb,
                  ln2g, ln2b, fc1w, fc1b, fc2w, fc2b,
                  ng_ref, nb_ref, hw_ref, hb_ref,
                  logits_ref, tok_ref):
    d = pl.program_id(1)                       # depth (inner, "arbitrary") axis
    tp, dim = tok_ref.shape
    row = jax.lax.broadcasted_iota(jnp.int32, (tp, 1), 0)

    # --- patch embed + cls + pos (only at the first depth step) ---------------
    @pl.when(d == 0)
    def _():
        # Conv2d(kernel=patch, stride=patch) == matmul over flattened patches.
        t0 = _mm(xp_ref[0], pw_ref[...], pb_ref[...])          # (Tp, D)
        t0 = jnp.where(row == 0, cls_ref[...], t0)             # cls token at row 0
        t0 = jnp.where(row >= t_base, 0.0, t0)                 # zero the pad rows
        tok_ref[...] = t0 + pos_ref[...]                       # + positional embed

    tok = tok_ref[...]                                         # (Tp, D) f32

    # --- add_prompt(i, x): splice this block's prompt rows into the tail ------
    # rows [t_base, t_valid) <- prompt embeddings; rows >= t_valid <- 0 (pad).
    tok = jnp.where(row >= t_base, pr_ref[0], tok)

    # --- attention sub-block (pre-norm) ----------------------------------------
    h = _layernorm(tok, ln1g[0], ln1b[0])
    qkv = _mm(h, qkvw[0], qkvb[0])                             # (Tp, 3*D) f32
    scale = 1.0 / math.sqrt(dh)
    kbias = jnp.where(
        jax.lax.broadcasted_iota(jnp.int32, (1, tp), 1) < t_valid, 0.0, -1e30)
    q_all = qkv[:, 0:dim] * scale                              # fold scale once
    k_all = qkv[:, dim:2 * dim]
    v_all = qkv[:, 2 * dim:3 * dim]
    pwmat = projw[0]                                           # (D, D) bf16
    attn = jnp.zeros((tp, dim), jnp.float32)
    for hd in range(heads):                                    # static unroll; tiny
        sl = slice(hd * dh, (hd + 1) * dh)
        q = q_all[:, sl].astype(jnp.bfloat16)
        k = k_all[:, sl].astype(jnp.bfloat16)
        v = v_all[:, sl].astype(jnp.bfloat16)
        s = jax.lax.dot_general(q, k, (((1,), (1,)), ((), ())),
                                preferred_element_type=jnp.float32) + kbias
        m = jnp.max(s, axis=-1, keepdims=True)
        p = jnp.exp(s - m)
        p = p * pl.reciprocal(jnp.sum(p, axis=-1, keepdims=True), approx=True)
        o_h = jnp.dot(p.astype(jnp.bfloat16), v,
                      preferred_element_type=jnp.float32)      # (Tp, dh)
        # concat-over-heads followed by proj == sum_h o_h @ proj_w[head rows]
        attn = attn + jnp.dot(o_h.astype(jnp.bfloat16), pwmat[sl, :],
                              preferred_element_type=jnp.float32)
    x1 = tok + attn + projb[0]

    # --- MLP sub-block (pre-norm) -----------------------------------------------
    h2 = _layernorm(x1, ln2g[0], ln2b[0])
    h2 = _gelu_exact(_mm(h2, fc1w[0], fc1b[0]))
    h2 = _mm(h2, fc2w[0], fc2b[0])
    out = x1 + h2

    # Block output back into the carried VMEM buffer. Prompt / pad rows are
    # overwritten at the next depth step, which realizes the
    # `x[:, :num_tokens - removes]` strip of the reference.
    tok_ref[...] = out

    # --- final norm + head (cls-token pooling), only at the last depth step -----
    @pl.when(d == pl.num_programs(1) - 1)
    def _():
        cls_t = _layernorm(out[0:1, :], ng_ref[...], nb_ref[...])   # (1, D)
        logit = _mm(cls_t, hw_ref[...], hb_ref[...])                # (1, nc_pad)
        # Broadcast over the 8-sublane output tile -> unmasked vector store.
        logits_ref[0] = jnp.broadcast_to(
            logit, (logits_ref.shape[1], logit.shape[1])).astype(logits_ref.dtype)


# ----------------------------------------------------------------------------
# Deterministic parameter construction (synthetic ViT + prompt embeddings)
# ----------------------------------------------------------------------------

def _round_up(x, m):
    return ((x + m - 1) // m) * m


def derive_token_layout(img_size, patch, local_prompt_num, global_prompt_num):
    num_patches = (img_size // patch) ** 2
    t_base = 1 + num_patches                                   # cls + patches
    t_valid = t_base + local_prompt_num + global_prompt_num    # + prompt rows
    tokens_pad = _round_up(t_valid, 8)                         # sublane-aligned
    return num_patches, t_base, t_valid, tokens_pad


def init_params(key, *, img_size, patch, in_chans, embed_dim, depth, heads,
                mlp_ratio, num_classes, local_prompt_num, global_prompt_num):
    assert embed_dim % heads == 0
    D = embed_dim
    num_patches, t_base, t_valid, tokens_pad = derive_token_layout(
        img_size, patch, local_prompt_num, global_prompt_num)
    hidden = int(D * mlp_ratio)
    cpp = in_chans * patch * patch
    nc_pad = max(_round_up(num_classes, 128), 128)             # lane-dense head
    keys = jax.random.split(key, 10)

    def normal(k, shape, std=0.02):
        return std * jax.random.normal(k, shape, dtype=jnp.float32)

    pos = normal(keys[2], (t_base, D))
    pos_pad = jnp.zeros((tokens_pad, D), jnp.float32).at[:t_base].set(pos)

    head_w = jnp.zeros((D, nc_pad), jnp.float32)
    head_w = head_w.at[:, :num_classes].set(normal(keys[3], (D, num_classes)))

    params = {
        "patch_w": normal(keys[0], (cpp, D)).astype(jnp.bfloat16),
        "patch_b": jnp.zeros((1, D), jnp.float32),
        "cls": normal(keys[1], (1, D)),
        "pos_pad": pos_pad,
        "norm_g": jnp.ones((1, D), jnp.float32),
        "norm_b": jnp.zeros((1, D), jnp.float32),
        "head_w": head_w.astype(jnp.bfloat16),
        "head_b": jnp.zeros((1, nc_pad), jnp.float32),
        "blocks": {
            "ln1_g": jnp.ones((depth, 1, D), jnp.float32),
            "ln1_b": jnp.zeros((depth, 1, D), jnp.float32),
            "qkv_w": normal(keys[4], (depth, D, 3 * D)).astype(jnp.bfloat16),
            "qkv_b": jnp.zeros((depth, 1, 3 * D), jnp.float32),
            "proj_w": normal(keys[5], (depth, D, D)).astype(jnp.bfloat16),
            "proj_b": jnp.zeros((depth, 1, D), jnp.float32),
            "ln2_g": jnp.ones((depth, 1, D), jnp.float32),
            "ln2_b": jnp.zeros((depth, 1, D), jnp.float32),
            "fc1_w": normal(keys[6], (depth, D, hidden)).astype(jnp.bfloat16),
            "fc1_b": jnp.zeros((depth, 1, hidden), jnp.float32),
            "fc2_w": normal(keys[7], (depth, hidden, D)).astype(jnp.bfloat16),
            "fc2_b": jnp.zeros((depth, 1, D), jnp.float32),
        },
    }

    # Prompt embeddings: uniform(-val, val), val = sqrt(6/(3*prod(patch)+dim)).
    val = math.sqrt(6.0 / float(3 * reduce(mul, (patch, patch), 1) + D))
    local_emb = jax.random.uniform(keys[8], (depth, local_prompt_num, D),
                                   jnp.float32, -val, val)
    global_emb = jax.random.uniform(keys[9], (depth, global_prompt_num, D),
                                    jnp.float32, -val, val)
    params["local_prompt_embeddings"] = local_emb
    params["global_prompt_embeddings"] = global_emb
    # Per-depth prompt table laid out directly into the padded token rows
    # [t_base, t_valid); rows >= t_valid stay zero (attention-masked padding).
    # TODO(synk): local/global prompt dropout omitted (eval/inference semantics).
    pr = jnp.zeros((depth, tokens_pad, D), jnp.float32)
    pr = pr.at[:, t_base:t_base + local_prompt_num].set(local_emb)
    pr = pr.at[:, t_base + local_prompt_num:t_valid].set(global_emb)
    params["prompt_pad"] = pr
    return params


# ----------------------------------------------------------------------------
# Forward pass (single fused pallas_call)
# ----------------------------------------------------------------------------

def make_prompt_forward(*, img_size, patch, in_chans, heads, num_classes,
                        local_prompt_num, global_prompt_num):
    grid_hw = img_size // patch
    num_patches, t_base, t_valid, tokens_pad = derive_token_layout(
        img_size, patch, local_prompt_num, global_prompt_num)
    cpp = in_chans * patch * patch

    @jax.jit
    def forward(x_img, params):
        B = x_img.shape[0]
        D = params["cls"].shape[1]
        depth = params["prompt_pad"].shape[0]
        nc_pad = params["head_w"].shape[1]
        dh = D // heads
        blocks = params["blocks"]

        # Patch extraction is a pure layout op; the conv itself is the
        # in-kernel matmul over flattened patches.
        xp = x_img.reshape(B, in_chans, grid_hw, patch, grid_hw, patch)
        xp = xp.transpose(0, 2, 4, 1, 3, 5).reshape(B, num_patches, cpp)
        xp_pad = jnp.zeros((B, tokens_pad, cpp), jnp.float32)
        xp_pad = xp_pad.at[:, 1:1 + num_patches].set(xp.astype(jnp.float32))

        kernel = functools.partial(_fused_kernel, t_base, t_valid, heads, dh)

        def depth_spec(arr):
            tail = arr.shape[1:]
            return pl.BlockSpec((1,) + tail,
                                lambda b, d, n=len(tail): (d,) + (0,) * n)

        def const_spec(arr):
            return pl.BlockSpec(arr.shape,
                                lambda b, d, n=arr.ndim: (0,) * n)

        in_specs = [
            pl.BlockSpec((1, tokens_pad, cpp), lambda b, d: (b, 0, 0)),  # patches
            const_spec(params["patch_w"]),
            const_spec(params["patch_b"]),
            const_spec(params["cls"]),
            const_spec(params["pos_pad"]),
            depth_spec(params["prompt_pad"]),
        ]
        in_specs += [depth_spec(blocks[k]) for k in _BLOCK_PARAM_ORDER]
        in_specs += [const_spec(params["norm_g"]),
                     const_spec(params["norm_b"]),
                     const_spec(params["head_w"]),
                     const_spec(params["head_b"])]

        logits = pl.pallas_call(
            kernel,
            out_shape=jax.ShapeDtypeStruct((B, 8, nc_pad), jnp.float32),
            grid=(B, depth),
            in_specs=in_specs,
            out_specs=pl.BlockSpec((1, 8, nc_pad), lambda b, d: (b, 0, 0)),
            scratch_shapes=[pltpu.VMEM((tokens_pad, D), jnp.float32)],
            compiler_params=pltpu.CompilerParams(
                dimension_semantics=("parallel", "arbitrary")),
        )(xp_pad, params["patch_w"], params["patch_b"], params["cls"],
          params["pos_pad"], params["prompt_pad"],
          *[blocks[k] for k in _BLOCK_PARAM_ORDER],
          params["norm_g"], params["norm_b"],
          params["head_w"], params["head_b"])

        return logits[:, 0, :num_classes]

    return forward


# ----------------------------------------------------------------------------

if __name__ == "__main__":
    # Small, lane-dense synthetic ViT config (D=128 fills full 128-lane vregs;
    # 17 base tokens + 2 prompt tokens padded to 24 sublane-aligned rows).
    B, C, IMG, P = 2, 3, 16, 4            # 16 patches of 4x4 -> 17 base tokens
    D, DEPTH, HEADS, MLP_RATIO = 128, 2, 4, 4.0
    NUM_CLASSES = 10
    LOCAL_PROMPTS, GLOBAL_PROMPTS = 1, 1

    key = jax.random.PRNGKey(0)
    k_param, k_inp = jax.random.split(key)
    params = init_params(
        k_param, img_size=IMG, patch=P, in_chans=C, embed_dim=D, depth=DEPTH,
        heads=HEADS, mlp_ratio=MLP_RATIO, num_classes=NUM_CLASSES,
        local_prompt_num=LOCAL_PROMPTS, global_prompt_num=GLOBAL_PROMPTS)

    forward = make_prompt_forward(
        img_size=IMG, patch=P, in_chans=C, heads=HEADS, num_classes=NUM_CLASSES,
        local_prompt_num=LOCAL_PROMPTS, global_prompt_num=GLOBAL_PROMPTS)

    x = jax.random.normal(k_inp, (B, C, IMG, IMG), dtype=jnp.float32)  # NCHW

    logits = forward(x, params)
    logits = jax.block_until_ready(logits)

    assert logits.shape == (B, NUM_CLASSES)
    assert bool(jnp.all(jnp.isfinite(logits)))
    print("KERNEL_OK")
</pallas_src>

<mosaic_0001>
module attributes {stable_mosaic.version = 11 : i64} {
  func.func @_fused_kernel(%arg0: i32, %arg1: i32, %arg2: memref<1x24x48xf32, #tpu.memory_space<vmem>>, %arg3: memref<48x128xbf16, #tpu.memory_space<vmem>>, %arg4: memref<1x128xf32, #tpu.memory_space<vmem>>, %arg5: memref<1x128xf32, #tpu.memory_space<vmem>>, %arg6: memref<24x128xf32, #tpu.memory_space<vmem>>, %arg7: memref<1x24x128xf32, #tpu.memory_space<vmem>>, %arg8: memref<1x1x128xf32, #tpu.memory_space<vmem>>, %arg9: memref<1x1x128xf32, #tpu.memory_space<vmem>>, %arg10: memref<1x128x384xbf16, #tpu.memory_space<vmem>>, %arg11: memref<1x1x384xf32, #tpu.memory_space<vmem>>, %arg12: memref<1x128x128xbf16, #tpu.memory_space<vmem>>, %arg13: memref<1x1x128xf32, #tpu.memory_space<vmem>>, %arg14: memref<1x1x128xf32, #tpu.memory_space<vmem>>, %arg15: memref<1x1x128xf32, #tpu.memory_space<vmem>>, %arg16: memref<1x128x512xbf16, #tpu.memory_space<vmem>>, %arg17: memref<1x1x512xf32, #tpu.memory_space<vmem>>, %arg18: memref<1x512x128xbf16, #tpu.memory_space<vmem>>, %arg19: memref<1x1x128xf32, #tpu.memory_space<vmem>>, %arg20: memref<1x128xf32, #tpu.memory_space<vmem>>, %arg21: memref<1x128xf32, #tpu.memory_space<vmem>>, %arg22: memref<128x128xbf16, #tpu.memory_space<vmem>>, %arg23: memref<1x128xf32, #tpu.memory_space<vmem>>, %arg24: memref<1x8x128xf32, #tpu.memory_space<vmem>>, %arg25: memref<24x128xf32, #tpu.memory_space<vmem>>) attributes {dimension_semantics = [#tpu.dimension_semantics<parallel>, #tpu.dimension_semantics<arbitrary>], iteration_bounds = array<i64: 2, 2>, scalar_prefetch = 0 : i64, scratch_operands = 1 : i64, tpu.core_type = #tpu.core_type<tc>, window_params = [{transform_indices = @transform_0, window_bounds = array<i64: 1, 24, 48>}, {pipeline_mode = #tpu.pipeline_mode<synchronous>, transform_indices = @transform_1, window_bounds = array<i64: 48, 128>}, {pipeline_mode = #tpu.pipeline_mode<synchronous>, transform_indices = @transform_2, window_bounds = array<i64: 1, 128>}, {pipeline_mode = #tpu.pipeline_mode<synchronous>, transform_indices = @transform_3, window_bounds = array<i64: 1, 128>}, {pipeline_mode = #tpu.pipeline_mode<synchronous>, transform_indices = @transform_4, window_bounds = array<i64: 24, 128>}, {transform_indices = @transform_5, window_bounds = array<i64: 1, 24, 128>}, {transform_indices = @transform_6, window_bounds = array<i64: 1, 1, 128>}, {transform_indices = @transform_7, window_bounds = array<i64: 1, 1, 128>}, {transform_indices = @transform_8, window_bounds = array<i64: 1, 128, 384>}, {transform_indices = @transform_9, window_bounds = array<i64: 1, 1, 384>}, {transform_indices = @transform_10, window_bounds = array<i64: 1, 128, 128>}, {transform_indices = @transform_11, window_bounds = array<i64: 1, 1, 128>}, {transform_indices = @transform_12, window_bounds = array<i64: 1, 1, 128>}, {transform_indices = @transform_13, window_bounds = array<i64: 1, 1, 128>}, {transform_indices = @transform_14, window_bounds = array<i64: 1, 128, 512>}, {transform_indices = @transform_15, window_bounds = array<i64: 1, 1, 512>}, {transform_indices = @transform_16, window_bounds = array<i64: 1, 512, 128>}, {transform_indices = @transform_17, window_bounds = array<i64: 1, 1, 128>}, {pipeline_mode = #tpu.pipeline_mode<synchronous>, transform_indices = @transform_18, window_bounds = array<i64: 1, 128>}, {pipeline_mode = #tpu.pipeline_mode<synchronous>, transform_indices = @transform_19, window_bounds = array<i64: 1, 128>}, {pipeline_mode = #tpu.pipeline_mode<synchronous>, transform_indices = @transform_20, window_bounds = array<i64: 128, 128>}, {pipeline_mode = #tpu.pipeline_mode<synchronous>, transform_indices = @transform_21, window_bounds = array<i64: 1, 128>}, {transform_indices = @transform_22, window_bounds = array<i64: 1, 8, 128>}]} {
    %0 = tpu.iota {dimensions = array<i32: 0>} : vector<24x1xi32>
    %c0_i32 = arith.constant 0 : i32
    %1 = arith.cmpi eq, %arg1, %c0_i32 : i32
    %2 = arith.extui %1 : i1 to i32
    %c0_i32_0 = arith.constant 0 : i32
    %3 = arith.cmpi ne, %2, %c0_i32_0 : i32
    scf.if %3 {
      %c0_96 = arith.constant 0 : index
      %c0_97 = arith.constant 0 : index
      %c0_98 = arith.constant 0 : index
      %249 = vector.load %arg2[%c0_96, %c0_97, %c0_98] : memref<1x24x48xf32, #tpu.memory_space<vmem>>, vector<1x24x48xf32>
      %250 = vector.shape_cast %249 : vector<1x24x48xf32> to vector<24x48xf32>
      %c0_99 = arith.constant 0 : index
      %c0_100 = arith.constant 0 : index
      %251 = vector.load %arg3[%c0_99, %c0_100] : memref<48x128xbf16, #tpu.memory_space<vmem>>, vector<48x128xbf16>
      %c0_101 = arith.constant 0 : index
      %c0_102 = arith.constant 0 : index
      %252 = vector.load %arg4[%c0_101, %c0_102] : memref<1x128xf32, #tpu.memory_space<vmem>>, vector<1x128xf32>
      %253 = arith.truncf %250 : vector<24x48xf32> to vector<24x48xbf16>
      %cst_103 = arith.constant dense<0.000000e+00> : vector<24x128xf32>
      %254 = tpu.matmul %253, %251, %cst_103 {dimension_numbers = #tpu.dot_dimension_numbers<[1], [0], [0], [1], [0, 0, 1, 1], [], []>} : vector<24x48xbf16>, vector<48x128xbf16>, vector<24x128xf32> -> vector<24x128xf32>
      %255 = vector.broadcast %252 : vector<1x128xf32> to vector<24x128xf32>
      %256 = arith.addf %254, %255 : vector<24x128xf32>
      %c0_i32_104 = arith.constant 0 : i32
      %257 = vector.broadcast %c0_i32_104 : i32 to vector<24x1xi32>
      %258 = arith.cmpi eq, %0, %257 : vector<24x1xi32>
      %c0_105 = arith.constant 0 : index
      %c0_106 = arith.constant 0 : index
      %259 = vector.load %arg5[%c0_105, %c0_106] : memref<1x128xf32, #tpu.memory_space<vmem>>, vector<1x128xf32>
      %260 = vector.shape_cast %258 : vector<24x1xi1> to vector<24x1xi1>
      %261 = vector.broadcast %260 : vector<24x1xi1> to vector<24x128xi1>
      %262 = vector.shape_cast %259 : vector<1x128xf32> to vector<1x128xf32>
      %263 = vector.broadcast %262 : vector<1x128xf32> to vector<24x128xf32>
      %264 = arith.select %261, %263, %256 : vector<24x128xi1>, vector<24x128xf32>
      %c17_i32_107 = arith.constant 17 : i32
      %265 = vector.broadcast %c17_i32_107 : i32 to vector<24x1xi32>
      %266 = arith.cmpi sge, %0, %265 : vector<24x1xi32>
      %cst_108 = arith.constant 0.000000e+00 : f32
      %267 = vector.shape_cast %266 : vector<24x1xi1> to vector<24x1xi1>
      %268 = vector.broadcast %267 : vector<24x1xi1> to vector<24x128xi1>
      %269 = vector.broadcast %cst_108 : f32 to vector<24x128xf32>
      %270 = arith.select %268, %269, %264 : vector<24x128xi1>, vector<24x128xf32>
      %c0_109 = arith.constant 0 : index
      %c0_110 = arith.constant 0 : index
      %271 = vector.load %arg6[%c0_109, %c0_110] : memref<24x128xf32, #tpu.memory_space<vmem>>, vector<24x128xf32>
      %272 = arith.addf %270, %271 : vector<24x128xf32>
      %c0_111 = arith.constant 0 : index
      %c0_112 = arith.constant 0 : index
      %273 = vector.load %arg25[%c0_111, %c0_112] : memref<24x128xf32, #tpu.memory_space<vmem>>, vector<24x128xf32>
      tpu.vector_store %arg25[%c0_111, %c0_112], %272 {strides = array<i32>} : memref<24x128xf32, #tpu.memory_space<vmem>>, vector<24x128xf32>,
    } else {
    }
    %c0 = arith.constant 0 : index
    %c0_1 = arith.constant 0 : index
    %4 = vector.load %arg25[%c0, %c0_1] : memref<24x128xf32, #tpu.memory_space<vmem>>, vector<24x128xf32>
    %c17_i32 = arith.constant 17 : i32
    %5 = vector.broadcast %c17_i32 : i32 to vector<24x1xi32>
    %6 = arith.cmpi sge, %0, %5 : vector<24x1xi32>
    %c0_2 = arith.constant 0 : index
    %c0_3 = arith.constant 0 : index
    %c0_4 = arith.constant 0 : index
    %7 = vector.load %arg7[%c0_2, %c0_3, %c0_4] : memref<1x24x128xf32, #tpu.memory_space<vmem>>, vector<1x24x128xf32>
    %8 = vector.shape_cast %7 : vector<1x24x128xf32> to vector<24x128xf32>
    %9 = vector.shape_cast %6 : vector<24x1xi1> to vector<24x1xi1>
    %10 = vector.broadcast %9 : vector<24x1xi1> to vector<24x128xi1>
    %11 = arith.select %10, %8, %4 : vector<24x128xi1>, vector<24x128xf32>
    %c0_5 = arith.constant 0 : index
    %c0_6 = arith.constant 0 : index
    %c0_7 = arith.constant 0 : index
    %12 = vector.load %arg8[%c0_5, %c0_6, %c0_7] : memref<1x1x128xf32, #tpu.memory_space<vmem>>, vector<1x1x128xf32>
    %13 = vector.shape_cast %12 : vector<1x1x128xf32> to vector<1x128xf32>
    %c0_8 = arith.constant 0 : index
    %c0_9 = arith.constant 0 : index
    %c0_10 = arith.constant 0 : index
    %14 = vector.load %arg9[%c0_8, %c0_9, %c0_10] : memref<1x1x128xf32, #tpu.memory_space<vmem>>, vector<1x1x128xf32>
    %15 = vector.shape_cast %14 : vector<1x1x128xf32> to vector<1x128xf32>
    %cst = arith.constant dense<0.000000e+00> : vector<24xf32>
    %16 = vector.multi_reduction <add>, %11, %cst [1] : vector<24x128xf32> to vector<24xf32>
    %17 = vector.shape_cast %16 : vector<24xf32> to vector<24x1xf32>
    %cst_11 = arith.constant 1.280000e+02 : f32
    %18 = vector.broadcast %cst_11 : f32 to vector<24x1xf32>
    %19 = arith.divf %17, %18 : vector<24x1xf32>
    %20 = vector.broadcast %19 : vector<24x1xf32> to vector<24x128xf32>
    %21 = arith.subf %11, %20 : vector<24x128xf32>
    %22 = arith.mulf %21, %21 : vector<24x128xf32>
    %cst_12 = arith.constant dense<0.000000e+00> : vector<24xf32>
    %23 = vector.multi_reduction <add>, %22, %cst_12 [1] : vector<24x128xf32> to vector<24xf32>
    %24 = vector.shape_cast %23 : vector<24xf32> to vector<24x1xf32>
    %cst_13 = arith.constant 1.280000e+02 : f32
    %25 = vector.broadcast %cst_13 : f32 to vector<24x1xf32>
    %26 = arith.divf %24, %25 : vector<24x1xf32>
    %cst_14 = arith.constant 9.99999997E-7 : f32
    %27 = vector.broadcast %cst_14 : f32 to vector<24x1xf32>
    %28 = arith.addf %26, %27 : vector<24x1xf32>
    %29 = math.rsqrt %28 : vector<24x1xf32>
    %30 = vector.broadcast %29 : vector<24x1xf32> to vector<24x128xf32>
    %31 = arith.mulf %21, %30 : vector<24x128xf32>
    %32 = vector.broadcast %13 : vector<1x128xf32> to vector<24x128xf32>
    %33 = arith.mulf %31, %32 : vector<24x128xf32>
    %34 = vector.broadcast %15 : vector<1x128xf32> to vector<24x128xf32>
    %35 = arith.addf %33, %34 : vector<24x128xf32>
    %c0_15 = arith.constant 0 : index
    %c0_16 = arith.constant 0 : index
    %c0_17 = arith.constant 0 : index
    %36 = vector.load %arg10[%c0_15, %c0_16, %c0_17] : memref<1x128x384xbf16, #tpu.memory_space<vmem>>, vector<1x128x384xbf16>
    %37 = vector.shape_cast %36 : vector<1x128x384xbf16> to vector<128x384xbf16>
    %c0_18 = arith.constant 0 : index
    %c0_19 = arith.constant 0 : index
    %c0_20 = arith.constant 0 : index
    %38 = vector.load %arg11[%c0_18, %c0_19, %c0_20] : memref<1x1x384xf32, #tpu.memory_space<vmem>>, vector<1x1x384xf32>
    %39 = vector.shape_cast %38 : vector<1x1x384xf32> to vector<1x384xf32>
    %40 = arith.truncf %35 : vector<24x128xf32> to vector<24x128xbf16>
    %cst_21 = arith.constant dense<0.000000e+00> : vector<24x384xf32>
    %41 = tpu.matmul %40, %37, %cst_21 {dimension_numbers = #tpu.dot_dimension_numbers<[1], [0], [0], [1], [0, 0, 1, 1], [], []>} : vector<24x128xbf16>, vector<128x384xbf16>, vector<24x384xf32> -> vector<24x384xf32>
    %42 = vector.broadcast %39 : vector<1x384xf32> to vector<24x384xf32>
    %43 = arith.addf %41, %42 : vector<24x384xf32>
    %44 = tpu.iota {dimensions = array<i32: 1>} : vector<1x24xi32>
    %c19_i32 = arith.constant 19 : i32
    %45 = vector.broadcast %c19_i32 : i32 to vector<1x24xi32>
    %46 = arith.cmpi slt, %44, %45 : vector<1x24xi32>
    %cst_22 = arith.constant 0.000000e+00 : f32
    %cst_23 = arith.constant -1.000000e+30 : f32
    %47 = vector.broadcast %cst_22 : f32 to vector<1x24xf32>
    %48 = vector.broadcast %cst_23 : f32 to vector<1x24xf32>
    %49 = arith.select %46, %47, %48 : vector<1x24xi1>, vector<1x24xf32>
    %50 = vector.extract_strided_slice %43 {offsets = [0, 0], sizes = [24, 128], strides = [1, 1]} : vector<24x384xf32> to vector<24x128xf32>
    %cst_24 = arith.constant 0.176776692 : f32
    %51 = vector.broadcast %cst_24 : f32 to vector<24x128xf32>
    %52 = arith.mulf %50, %51 : vector<24x128xf32>
    %53 = vector.extract_strided_slice %43 {offsets = [0, 128], sizes = [24, 128], strides = [1, 1]} : vector<24x384xf32> to vector<24x128xf32>
    %54 = vector.extract_strided_slice %43 {offsets = [0, 256], sizes = [24, 128], strides = [1, 1]} : vector<24x384xf32> to vector<24x128xf32>
    %c0_25 = arith.constant 0 : index
    %c0_26 = arith.constant 0 : index
    %c0_27 = arith.constant 0 : index
    %55 = vector.load %arg12[%c0_25, %c0_26, %c0_27] : memref<1x128x128xbf16, #tpu.memory_space<vmem>>, vector<1x128x128xbf16>
    %56 = vector.shape_cast %55 : vector<1x128x128xbf16> to vector<128x128xbf16>
    %cst_28 = arith.constant 0.000000e+00 : f32
    %57 = vector.broadcast %cst_28 : f32 to vector<24x128xf32>
    %58 = vector.extract_strided_slice %52 {offsets = [0, 0], sizes = [24, 32], strides = [1, 1]} : vector<24x128xf32> to vector<24x32xf32>
    %59 = arith.truncf %58 : vector<24x32xf32> to vector<24x32xbf16>
    %60 = vector.extract_strided_slice %53 {offsets = [0, 0], sizes = [24, 32], strides = [1, 1]} : vector<24x128xf32> to vector<24x32xf32>
    %61 = arith.truncf %60 : vector<24x32xf32> to vector<24x32xbf16>
    %62 = vector.extract_strided_slice %54 {offsets = [0, 0], sizes = [24, 32], strides = [1, 1]} : vector<24x128xf32> to vector<24x32xf32>
    %63 = arith.truncf %62 : vector<24x32xf32> to vector<24x32xbf16>
    %cst_29 = arith.constant dense<0.000000e+00> : vector<24x24xf32>
    %64 = tpu.matmul %59, %61, %cst_29 {dimension_numbers = #tpu.dot_dimension_numbers<[1], [1], [0], [0], [0, 0, 1, 0], [], []>} : vector<24x32xbf16>, vector<24x32xbf16>, vector<24x24xf32> -> vector<24x24xf32>
    %65 = vector.broadcast %49 : vector<1x24xf32> to vector<24x24xf32>
    %66 = arith.addf %64, %65 : vector<24x24xf32>
    %cst_30 = arith.constant dense<0xFF800000> : vector<24xf32>
    %67 = vector.multi_reduction <maximumf>, %66, %cst_30 [1] : vector<24x24xf32> to vector<24xf32>
    %68 = vector.shape_cast %67 : vector<24xf32> to vector<24x1xf32>
    %69 = vector.broadcast %68 : vector<24x1xf32> to vector<24x24xf32>
    %70 = arith.subf %66, %69 : vector<24x24xf32>
    %71 = math.exp %70 : vector<24x24xf32>
    %cst_31 = arith.constant dense<0.000000e+00> : vector<24xf32>
    %72 = vector.multi_reduction <add>, %71, %cst_31 [1] : vector<24x24xf32> to vector<24xf32>
    %73 = vector.shape_cast %72 : vector<24xf32> to vector<24x1xf32>
    %74 = tpu.reciprocal %73 {approx = true} : vector<24x1xf32> -> vector<24x1xf32>
    %75 = vector.broadcast %74 : vector<24x1xf32> to vector<24x24xf32>
    %76 = arith.mulf %71, %75 : vector<24x24xf32>
    %77 = arith.truncf %76 : vector<24x24xf32> to vector<24x24xbf16>
    %cst_32 = arith.constant dense<0.000000e+00> : vector<24x32xf32>
    %78 = tpu.matmul %77, %63, %cst_32 {dimension_numbers = #tpu.dot_dimension_numbers<[1], [0], [0], [1], [0, 0, 1, 1], [], []>} : vector<24x24xbf16>, vector<24x32xbf16>, vector<24x32xf32> -> vector<24x32xf32>
    %79 = arith.truncf %78 : vector<24x32xf32> to vector<24x32xbf16>
    %80 = vector.extract_strided_slice %56 {offsets = [0, 0], sizes = [32, 128], strides = [1, 1]} : vector<128x128xbf16> to vector<32x128xbf16>
    %cst_33 = arith.constant dense<0.000000e+00> : vector<24x128xf32>
    %81 = tpu.matmul %79, %80, %cst_33 {dimension_numbers = #tpu.dot_dimension_numbers<[1], [0], [0], [1], [0, 0, 1, 1], [], []>} : vector<24x32xbf16>, vector<32x128xbf16>, vector<24x128xf32> -> vector<24x128xf32>
    %82 = arith.addf %57, %81 : vector<24x128xf32>
    %83 = vector.extract_strided_slice %52 {offsets = [0, 32], sizes = [24, 32], strides = [1, 1]} : vector<24x128xf32> to vector<24x32xf32>
    %84 = arith.truncf %83 : vector<24x32xf32> to vector<24x32xbf16>
    %85 = vector.extract_strided_slice %53 {offsets = [0, 32], sizes = [24, 32], strides = [1, 1]} : vector<24x128xf32> to vector<24x32xf32>
    %86 = arith.truncf %85 : vector<24x32xf32> to vector<24x32xbf16>
    %87 = vector.extract_strided_slice %54 {offsets = [0, 32], sizes = [24, 32], strides = [1, 1]} : vector<24x128xf32> to vector<24x32xf32>
    %88 = arith.truncf %87 : vector<24x32xf32> to vector<24x32xbf16>
    %cst_34 = arith.constant dense<0.000000e+00> : vector<24x24xf32>
    %89 = tpu.matmul %84, %86, %cst_34 {dimension_numbers = #tpu.dot_dimension_numbers<[1], [1], [0], [0], [0, 0, 1, 0], [], []>} : vector<24x32xbf16>, vector<24x32xbf16>, vector<24x24xf32> -> vector<24x24xf32>
    %90 = vector.broadcast %49 : vector<1x24xf32> to vector<24x24xf32>
    %91 = arith.addf %89, %90 : vector<24x24xf32>
    %cst_35 = arith.constant dense<0xFF800000> : vector<24xf32>
    %92 = vector.multi_reduction <maximumf>, %91, %cst_35 [1] : vector<24x24xf32> to vector<24xf32>
    %93 = vector.shape_cast %92 : vector<24xf32> to vector<24x1xf32>
    %94 = vector.broadcast %93 : vector<24x1xf32> to vector<24x24xf32>
    %95 = arith.subf %91, %94 : vector<24x24xf32>
    %96 = math.exp %95 : vector<24x24xf32>
    %cst_36 = arith.constant dense<0.000000e+00> : vector<24xf32>
    %97 = vector.multi_reduction <add>, %96, %cst_36 [1] : vector<24x24xf32> to vector<24xf32>
    %98 = vector.shape_cast %97 : vector<24xf32> to vector<24x1xf32>
    %99 = tpu.reciprocal %98 {approx = true} : vector<24x1xf32> -> vector<24x1xf32>
    %100 = vector.broadcast %99 : vector<24x1xf32> to vector<24x24xf32>
    %101 = arith.mulf %96, %100 : vector<24x24xf32>
    %102 = arith.truncf %101 : vector<24x24xf32> to vector<24x24xbf16>
    %cst_37 = arith.constant dense<0.000000e+00> : vector<24x32xf32>
    %103 = tpu.matmul %102, %88, %cst_37 {dimension_numbers = #tpu.dot_dimension_numbers<[1], [0], [0], [1], [0, 0, 1, 1], [], []>} : vector<24x24xbf16>, vector<24x32xbf16>, vector<24x32xf32> -> vector<24x32xf32>
    %104 = arith.truncf %103 : vector<24x32xf32> to vector<24x32xbf16>
    %105 = vector.extract_strided_slice %56 {offsets = [32, 0], sizes = [32, 128], strides = [1, 1]} : vector<128x128xbf16> to vector<32x128xbf16>
    %cst_38 = arith.constant dense<0.000000e+00> : vector<24x128xf32>
    %106 = tpu.matmul %104, %105, %cst_38 {dimension_numbers = #tpu.dot_dimension_numbers<[1], [0], [0], [1], [0, 0, 1, 1], [], []>} : vector<24x32xbf16>, vector<32x128xbf16>, vector<24x128xf32> -> vector<24x128xf32>
    %107 = arith.addf %82, %106 : vector<24x128xf32>
    %108 = vector.extract_strided_slice %52 {offsets = [0, 64], sizes = [24, 32], strides = [1, 1]} : vector<24x128xf32> to vector<24x32xf32>
    %109 = arith.truncf %108 : vector<24x32xf32> to vector<24x32xbf16>
    %110 = vector.extract_strided_slice %53 {offsets = [0, 64], sizes = [24, 32], strides = [1, 1]} : vector<24x128xf32> to vector<24x32xf32>
    %111 = arith.truncf %110 : vector<24x32xf32> to vector<24x32xbf16>
    %112 = vector.extract_strided_slice %54 {offsets = [0, 64], sizes = [24, 32], strides = [1, 1]} : vector<24x128xf32> to vector<24x32xf32>
    %113 = arith.truncf %112 : vector<24x32xf32> to vector<24x32xbf16>
    %cst_39 = arith.constant dense<0.000000e+00> : vector<24x24xf32>
    %114 = tpu.matmul %109, %111, %cst_39 {dimension_numbers = #tpu.dot_dimension_numbers<[1], [1], [0], [0], [0, 0, 1, 0], [], []>} : vector<24x32xbf16>, vector<24x32xbf16>, vector<24x24xf32> -> vector<24x24xf32>
    %115 = vector.broadcast %49 : vector<1x24xf32> to vector<24x24xf32>
    %116 = arith.addf %114, %115 : vector<24x24xf32>
    %cst_40 = arith.constant dense<0xFF800000> : vector<24xf32>
    %117 = vector.multi_reduction <maximumf>, %116, %cst_40 [1] : vector<24x24xf32> to vector<24xf32>
    %118 = vector.shape_cast %117 : vector<24xf32> to vector<24x1xf32>
    %119 = vector.broadcast %118 : vector<24x1xf32> to vector<24x24xf32>
    %120 = arith.subf %116, %119 : vector<24x24xf32>
    %121 = math.exp %120 : vector<24x24xf32>
    %cst_41 = arith.constant dense<0.000000e+00> : vector<24xf32>
    %122 = vector.multi_reduction <add>, %121, %cst_41 [1] : vector<24x24xf32> to vector<24xf32>
    %123 = vector.shape_cast %122 : vector<24xf32> to vector<24x1xf32>
    %124 = tpu.reciprocal %123 {approx = true} : vector<24x1xf32> -> vector<24x1xf32>
    %125 = vector.broadcast %124 : vector<24x1xf32> to vector<24x24xf32>
    %126 = arith.mulf %121, %125 : vector<24x24xf32>
    %127 = arith.truncf %126 : vector<24x24xf32> to vector<24x24xbf16>
    %cst_42 = arith.constant dense<0.000000e+00> : vector<24x32xf32>
    %128 = tpu.matmul %127, %113, %cst_42 {dimension_numbers = #tpu.dot_dimension_numbers<[1], [0], [0], [1], [0, 0, 1, 1], [], []>} : vector<24x24xbf16>, vector<24x32xbf16>, vector<24x32xf32> -> vector<24x32xf32>
    %129 = arith.truncf %128 : vector<24x32xf32> to vector<24x32xbf16>
    %130 = vector.extract_strided_slice %56 {offsets = [64, 0], sizes = [32, 128], strides = [1, 1]} : vector<128x128xbf16> to vector<32x128xbf16>
    %cst_43 = arith.constant dense<0.000000e+00> : vector<24x128xf32>
    %131 = tpu.matmul %129, %130, %cst_43 {dimension_numbers = #tpu.dot_dimension_numbers<[1], [0], [0], [1], [0, 0, 1, 1], [], []>} : vector<24x32xbf16>, vector<32x128xbf16>, vector<24x128xf32> -> vector<24x128xf32>
    %132 = arith.addf %107, %131 : vector<24x128xf32>
    %133 = vector.extract_strided_slice %52 {offsets = [0, 96], sizes = [24, 32], strides = [1, 1]} : vector<24x128xf32> to vector<24x32xf32>
    %134 = arith.truncf %133 : vector<24x32xf32> to vector<24x32xbf16>
    %135 = vector.extract_strided_slice %53 {offsets = [0, 96], sizes = [24, 32], strides = [1, 1]} : vector<24x128xf32> to vector<24x32xf32>
    %136 = arith.truncf %135 : vector<24x32xf32> to vector<24x32xbf16>
    %137 = vector.extract_strided_slice %54 {offsets = [0, 96], sizes = [24, 32], strides = [1, 1]} : vector<24x128xf32> to vector<24x32xf32>
    %138 = arith.truncf %137 : vector<24x32xf32> to vector<24x32xbf16>
    %cst_44 = arith.constant dense<0.000000e+00> : vector<24x24xf32>
    %139 = tpu.matmul %134, %136, %cst_44 {dimension_numbers = #tpu.dot_dimension_numbers<[1], [1], [0], [0], [0, 0, 1, 0], [], []>} : vector<24x32xbf16>, vector<24x32xbf16>, vector<24x24xf32> -> vector<24x24xf32>
    %140 = vector.broadcast %49 : vector<1x24xf32> to vector<24x24xf32>
    %141 = arith.addf %139, %140 : vector<24x24xf32>
    %cst_45 = arith.constant dense<0xFF800000> : vector<24xf32>
    %142 = vector.multi_reduction <maximumf>, %141, %cst_45 [1] : vector<24x24xf32> to vector<24xf32>
    %143 = vector.shape_cast %142 : vector<24xf32> to vector<24x1xf32>
    %144 = vector.broadcast %143 : vector<24x1xf32> to vector<24x24xf32>
    %145 = arith.subf %141, %144 : vector<24x24xf32>
    %146 = math.exp %145 : vector<24x24xf32>
    %cst_46 = arith.constant dense<0.000000e+00> : vector<24xf32>
    %147 = vector.multi_reduction <add>, %146, %cst_46 [1] : vector<24x24xf32> to vector<24xf32>
    %148 = vector.shape_cast %147 : vector<24xf32> to vector<24x1xf32>
    %149 = tpu.reciprocal %148 {approx = true} : vector<24x1xf32> -> vector<24x1xf32>
    %150 = vector.broadcast %149 : vector<24x1xf32> to vector<24x24xf32>
    %151 = arith.mulf %146, %150 : vector<24x24xf32>
    %152 = arith.truncf %151 : vector<24x24xf32> to vector<24x24xbf16>
    %cst_47 = arith.constant dense<0.000000e+00> : vector<24x32xf32>
    %153 = tpu.matmul %152, %138, %cst_47 {dimension_numbers = #tpu.dot_dimension_numbers<[1], [0], [0], [1], [0, 0, 1, 1], [], []>} : vector<24x24xbf16>, vector<24x32xbf16>, vector<24x32xf32> -> vector<24x32xf32>
    %154 = arith.truncf %153 : vector<24x32xf32> to vector<24x32xbf16>
    %155 = vector.extract_strided_slice %56 {offsets = [96, 0], sizes = [32, 128], strides = [1, 1]} : vector<128x128xbf16> to vector<32x128xbf16>
    %cst_48 = arith.constant dense<0.000000e+00> : vector<24x128xf32>
    %156 = tpu.matmul %154, %155, %cst_48 {dimension_numbers = #tpu.dot_dimension_numbers<[1], [0], [0], [1], [0, 0, 1, 1], [], []>} : vector<24x32xbf16>, vector<32x128xbf16>, vector<24x128xf32> -> vector<24x128xf32>
    %157 = arith.addf %132, %156 : vector<24x128xf32>
    %158 = arith.addf %11, %157 : vector<24x128xf32>
    %c0_49 = arith.constant 0 : index
    %c0_50 = arith.constant 0 : index
    %c0_51 = arith.constant 0 : index
    %159 = vector.load %arg13[%c0_49, %c0_50, %c0_51] : memref<1x1x128xf32, #tpu.memory_space<vmem>>, vector<1x1x128xf32>
    %160 = vector.shape_cast %159 : vector<1x1x128xf32> to vector<1x128xf32>
    %161 = vector.broadcast %160 : vector<1x128xf32> to vector<24x128xf32>
    %162 = arith.addf %158, %161 : vector<24x128xf32>
    %c0_52 = arith.constant 0 : index
    %c0_53 = arith.constant 0 : index
    %c0_54 = arith.constant 0 : index
    %163 = vector.load %arg14[%c0_52, %c0_53, %c0_54] : memref<1x1x128xf32, #tpu.memory_space<vmem>>, vector<1x1x128xf32>
    %164 = vector.shape_cast %163 : vector<1x1x128xf32> to vector<1x128xf32>
    %c0_55 = arith.constant 0 : index
    %c0_56 = arith.constant 0 : index
    %c0_57 = arith.constant 0 : index
    %165 = vector.load %arg15[%c0_55, %c0_56, %c0_57] : memref<1x1x128xf32, #tpu.memory_space<vmem>>, vector<1x1x128xf32>
    %166 = vector.shape_cast %165 : vector<1x1x128xf32> to vector<1x128xf32>
    %cst_58 = arith.constant dense<0.000000e+00> : vector<24xf32>
    %167 = vector.multi_reduction <add>, %162, %cst_58 [1] : vector<24x128xf32> to vector<24xf32>
    %168 = vector.shape_cast %167 : vector<24xf32> to vector<24x1xf32>
    %cst_59 = arith.constant 1.280000e+02 : f32
    %169 = vector.broadcast %cst_59 : f32 to vector<24x1xf32>
    %170 = arith.divf %168, %169 : vector<24x1xf32>
    %171 = vector.broadcast %170 : vector<24x1xf32> to vector<24x128xf32>
    %172 = arith.subf %162, %171 : vector<24x128xf32>
    %173 = arith.mulf %172, %172 : vector<24x128xf32>
    %cst_60 = arith.constant dense<0.000000e+00> : vector<24xf32>
    %174 = vector.multi_reduction <add>, %173, %cst_60 [1] : vector<24x128xf32> to vector<24xf32>
    %175 = vector.shape_cast %174 : vector<24xf32> to vector<24x1xf32>
    %cst_61 = arith.constant 1.280000e+02 : f32
    %176 = vector.broadcast %cst_61 : f32 to vector<24x1xf32>
    %177 = arith.divf %175, %176 : vector<24x1xf32>
    %cst_62 = arith.constant 9.99999997E-7 : f32
    %178 = vector.broadcast %cst_62 : f32 to vector<24x1xf32>
    %179 = arith.addf %177, %178 : vector<24x1xf32>
    %180 = math.rsqrt %179 : vector<24x1xf32>
    %181 = vector.broadcast %180 : vector<24x1xf32> to vector<24x128xf32>
    %182 = arith.mulf %172, %181 : vector<24x128xf32>
    %183 = vector.broadcast %164 : vector<1x128xf32> to vector<24x128xf32>
    %184 = arith.mulf %182, %183 : vector<24x128xf32>
    %185 = vector.broadcast %166 : vector<1x128xf32> to vector<24x128xf32>
    %186 = arith.addf %184, %185 : vector<24x128xf32>
    %c0_63 = arith.constant 0 : index
    %c0_64 = arith.constant 0 : index
    %c0_65 = arith.constant 0 : index
    %187 = vector.load %arg16[%c0_63, %c0_64, %c0_65] : memref<1x128x512xbf16, #tpu.memory_space<vmem>>, vector<1x128x512xbf16>
    %188 = vector.shape_cast %187 : vector<1x128x512xbf16> to vector<128x512xbf16>
    %c0_66 = arith.constant 0 : index
    %c0_67 = arith.constant 0 : index
    %c0_68 = arith.constant 0 : index
    %189 = vector.load %arg17[%c0_66, %c0_67, %c0_68] : memref<1x1x512xf32, #tpu.memory_space<vmem>>, vector<1x1x512xf32>
    %190 = vector.shape_cast %189 : vector<1x1x512xf32> to vector<1x512xf32>
    %191 = arith.truncf %186 : vector<24x128xf32> to vector<24x128xbf16>
    %cst_69 = arith.constant dense<0.000000e+00> : vector<24x512xf32>
    %192 = tpu.matmul %191, %188, %cst_69 {dimension_numbers = #tpu.dot_dimension_numbers<[1], [0], [0], [1], [0, 0, 1, 1], [], []>} : vector<24x128xbf16>, vector<128x512xbf16>, vector<24x512xf32> -> vector<24x512xf32>
    %193 = vector.broadcast %190 : vector<1x512xf32> to vector<24x512xf32>
    %194 = arith.addf %192, %193 : vector<24x512xf32>
    %cst_70 = arith.constant 5.000000e-01 : f32
    %195 = vector.broadcast %cst_70 : f32 to vector<24x512xf32>
    %196 = arith.mulf %195, %194 : vector<24x512xf32>
    %cst_71 = arith.constant 0.707106769 : f32
    %197 = vector.broadcast %cst_71 : f32 to vector<24x512xf32>
    %198 = arith.mulf %194, %197 : vector<24x512xf32>
    %cst_72 = arith.constant 0.000000e+00 : f32
    %199 = vector.broadcast %cst_72 : f32 to vector<24x512xf32>
    %200 = arith.cmpf oge, %198, %199 : vector<24x512xf32>
    %cst_73 = arith.constant 1.000000e+00 : f32
    %cst_74 = arith.constant -1.000000e+00 : f32
    %201 = vector.broadcast %cst_73 : f32 to vector<24x512xf32>
    %202 = vector.broadcast %cst_74 : f32 to vector<24x512xf32>
    %203 = arith.select %200, %201, %202 : vector<24x512xi1>, vector<24x512xf32>
    %204 = math.absf %198 : vector<24x512xf32>
    %cst_75 = arith.constant 0.327591091 : f32
    %205 = vector.broadcast %cst_75 : f32 to vector<24x512xf32>
    %206 = arith.mulf %205, %204 : vector<24x512xf32>
    %cst_76 = arith.constant 1.000000e+00 : f32
    %207 = vector.broadcast %cst_76 : f32 to vector<24x512xf32>
    %208 = arith.addf %207, %206 : vector<24x512xf32>
    %cst_77 = arith.constant 1.000000e+00 : f32
    %209 = vector.broadcast %cst_77 : f32 to vector<24x512xf32>
    %210 = arith.divf %209, %208 : vector<24x512xf32>
    %cst_78 = arith.constant 1.06140542 : f32
    %211 = vector.broadcast %cst_78 : f32 to vector<24x512xf32>
    %212 = arith.mulf %211, %210 : vector<24x512xf32>
    %cst_79 = arith.constant -1.45315206 : f32
    %213 = vector.broadcast %cst_79 : f32 to vector<24x512xf32>
    %214 = arith.addf %212, %213 : vector<24x512xf32>
    %215 = arith.mulf %214, %210 : vector<24x512xf32>
    %cst_80 = arith.constant 1.42141378 : f32
    %216 = vector.broadcast %cst_80 : f32 to vector<24x512xf32>
    %217 = arith.addf %215, %216 : vector<24x512xf32>
    %218 = arith.mulf %217, %210 : vector<24x512xf32>
    %cst_81 = arith.constant -0.284496725 : f32
    %219 = vector.broadcast %cst_81 : f32 to vector<24x512xf32>
    %220 = arith.addf %218, %219 : vector<24x512xf32>
    %221 = arith.mulf %220, %210 : vector<24x512xf32>
    %cst_82 = arith.constant 0.254829586 : f32
    %222 = vector.broadcast %cst_82 : f32 to vector<24x512xf32>
    %223 = arith.addf %221, %222 : vector<24x512xf32>
    %224 = arith.mulf %223, %210 : vector<24x512xf32>
    %cst_83 = arith.constant 0.000000e+00 : f32
    %225 = vector.broadcast %cst_83 : f32 to vector<24x512xf32>
    %226 = arith.subf %225, %204 : vector<24x512xf32>
    %227 = arith.mulf %226, %204 : vector<24x512xf32>
    %228 = math.exp %227 : vector<24x512xf32>
    %229 = arith.mulf %224, %228 : vector<24x512xf32>
    %cst_84 = arith.constant 1.000000e+00 : f32
    %230 = vector.broadcast %cst_84 : f32 to vector<24x512xf32>
    %231 = arith.subf %230, %229 : vector<24x512xf32>
    %232 = arith.mulf %203, %231 : vector<24x512xf32>
    %cst_85 = arith.constant 1.000000e+00 : f32
    %233 = vector.broadcast %cst_85 : f32 to vector<24x512xf32>
    %234 = arith.addf %233, %232 : vector<24x512xf32>
    %235 = arith.mulf %196, %234 : vector<24x512xf32>
    %c0_86 = arith.constant 0 : index
    %c0_87 = arith.constant 0 : index
    %c0_88 = arith.constant 0 : index
    %236 = vector.load %arg18[%c0_86, %c0_87, %c0_88] : memref<1x512x128xbf16, #tpu.memory_space<vmem>>, vector<1x512x128xbf16>
    %237 = vector.shape_cast %236 : vector<1x512x128xbf16> to vector<512x128xbf16>
    %c0_89 = arith.constant 0 : index
    %c0_90 = arith.constant 0 : index
    %c0_91 = arith.constant 0 : index
    %238 = vector.load %arg19[%c0_89, %c0_90, %c0_91] : memref<1x1x128xf32, #tpu.memory_space<vmem>>, vector<1x1x128xf32>
    %239 = vector.shape_cast %238 : vector<1x1x128xf32> to vector<1x128xf32>
    %240 = arith.truncf %235 : vector<24x512xf32> to vector<24x512xbf16>
    %cst_92 = arith.constant dense<0.000000e+00> : vector<24x128xf32>
    %241 = tpu.matmul %240, %237, %cst_92 {dimension_numbers = #tpu.dot_dimension_numbers<[1], [0], [0], [1], [0, 0, 1, 1], [], []>} : vector<24x512xbf16>, vector<512x128xbf16>, vector<24x128xf32> -> vector<24x128xf32>
    %242 = vector.broadcast %239 : vector<1x128xf32> to vector<24x128xf32>
    %243 = arith.addf %241, %242 : vector<24x128xf32>
    %244 = arith.addf %162, %243 : vector<24x128xf32>
    %c0_93 = arith.constant 0 : index
    %c0_94 = arith.constant 0 : index
    %245 = vector.load %arg25[%c0_93, %c0_94] : memref<24x128xf32, #tpu.memory_space<vmem>>, vector<24x128xf32>
    tpu.vector_store %arg25[%c0_93, %c0_94], %244 {strides = array<i32>} : memref<24x128xf32, #tpu.memory_space<vmem>>, vector<24x128xf32>,
    %c1_i32 = arith.constant 1 : i32
    %246 = arith.cmpi eq, %arg1, %c1_i32 : i32
    %247 = arith.extui %246 : i1 to i32
    %c0_i32_95 = arith.constant 0 : i32
    %248 = arith.cmpi ne, %247, %c0_i32_95 : i32
    scf.if %248 {
      %249 = vector.extract_strided_slice %244 {offsets = [0, 0], sizes = [1, 128], strides = [1, 1]} : vector<24x128xf32> to vector<1x128xf32>
      %c0_96 = arith.constant 0 : index
      %c0_97 = arith.constant 0 : index
      %250 = vector.load %arg20[%c0_96, %c0_97] : memref<1x128xf32, #tpu.memory_space<vmem>>, vector<1x128xf32>
      %c0_98 = arith.constant 0 : index
      %c0_99 = arith.constant 0 : index
      %251 = vector.load %arg21[%c0_98, %c0_99] : memref<1x128xf32, #tpu.memory_space<vmem>>, vector<1x128xf32>
      %cst_100 = arith.constant dense<0.000000e+00> : vector<1xf32>
      %252 = vector.multi_reduction <add>, %249, %cst_100 [1] : vector<1x128xf32> to vector<1xf32>
      %253 = vector.shape_cast %252 : vector<1xf32> to vector<1x1xf32>
      %cst_101 = arith.constant 1.280000e+02 : f32
      %254 = vector.broadcast %cst_101 : f32 to vector<1x1xf32>
      %255 = arith.divf %253, %254 : vector<1x1xf32>
      %256 = vector.broadcast %255 : vector<1x1xf32> to vector<1x128xf32>
      %257 = arith.subf %249, %256 : vector<1x128xf32>
      %258 = arith.mulf %257, %257 : vector<1x128xf32>
      %cst_102 = arith.constant dense<0.000000e+00> : vector<1xf32>
      %259 = vector.multi_reduction <add>, %258, %cst_102 [1] : vector<1x128xf32> to vector<1xf32>
      %260 = vector.shape_cast %259 : vector<1xf32> to vector<1x1xf32>
      %cst_103 = arith.constant 1.280000e+02 : f32
      %261 = vector.broadcast %cst_103 : f32 to vector<1x1xf32>
      %262 = arith.divf %260, %261 : vector<1x1xf32>
      %cst_104 = arith.constant 9.99999997E-7 : f32
      %263 = vector.broadcast %cst_104 : f32 to vector<1x1xf32>
      %264 = arith.addf %262, %263 : vector<1x1xf32>
      %265 = math.rsqrt %264 : vector<1x1xf32>
      %266 = vector.broadcast %265 : vector<1x1xf32> to vector<1x128xf32>
      %267 = arith.mulf %257, %266 : vector<1x128xf32>
      %268 = arith.mulf %267, %250 : vector<1x128xf32>
      %269 = arith.addf %268, %251 : vector<1x128xf32>
      %c0_105 = arith.constant 0 : index
      %c0_106 = arith.constant 0 : index
      %270 = vector.load %arg22[%c0_105, %c0_106] : memref<128x128xbf16, #tpu.memory_space<vmem>>, vector<128x128xbf16>
      %c0_107 = arith.constant 0 : index
      %c0_108 = arith.constant 0 : index
      %271 = vector.load %arg23[%c0_107, %c0_108] : memref<1x128xf32, #tpu.memory_space<vmem>>, vector<1x128xf32>
      %272 = arith.truncf %269 : vector<1x128xf32> to vector<1x128xbf16>
      %cst_109 = arith.constant dense<0.000000e+00> : vector<1x128xf32>
      %273 = tpu.matmul %272, %270, %cst_109 {dimension_numbers = #tpu.dot_dimension_numbers<[1], [0], [0], [1], [0, 0, 1, 1], [], []>} : vector<1x128xbf16>, vector<128x128xbf16>, vector<1x128xf32> -> vector<1x128xf32>
      %274 = arith.addf %273, %271 : vector<1x128xf32>
      %275 = vector.shape_cast %274 : vector<1x128xf32> to vector<1x128xf32>
      %276 = vector.broadcast %275 : vector<1x128xf32> to vector<8x128xf32>
      %c0_110 = arith.constant 0 : index
      %c0_111 = arith.constant 0 : index
      %c0_112 = arith.constant 0 : index
      %277 = vector.load %arg24[%c0_110, %c0_111, %c0_112] : memref<1x8x128xf32, #tpu.memory_space<vmem>>, vector<1x8x128xf32>
      %278 = vector.shape_cast %277 : vector<1x8x128xf32> to vector<8x128xf32>
      %279 = vector.shape_cast %276 : vector<8x128xf32> to vector<1x8x128xf32>
      tpu.vector_store %arg24[%c0_110, %c0_111, %c0_112], %279 {strides = array<i32>} : memref<1x8x128xf32, #tpu.memory_space<vmem>>, vector<1x8x128xf32>,
    } else {
    }
    return
  }
  func.func @transform_0(%arg0: i32, %arg1: i32) -> (i32, i32, i32) {
    %c0_i32 = arith.constant 0 : i32
    %c0_i32_0 = arith.constant 0 : i32
    %c0_i32_1 = arith.constant 0 : i32
    return %arg0, %c0_i32, %c0_i32_0 : i32, i32, i32
  }
  func.func @transform_1(%arg0: i32, %arg1: i32) -> (i32, i32) {
    %c0_i32 = arith.constant 0 : i32
    %c0_i32_0 = arith.constant 0 : i32
    %c0_i32_1 = arith.constant 0 : i32
    return %c0_i32, %c0_i32_0 : i32, i32
  }
  func.func @transform_2(%arg0: i32, %arg1: i32) -> (i32, i32) {
    %c0_i32 = arith.constant 0 : i32
    %c0_i32_0 = arith.constant 0 : i32
    %c0_i32_1 = arith.constant 0 : i32
    return %c0_i32, %c0_i32_0 : i32, i32
  }
  func.func @transform_3(%arg0: i32, %arg1: i32) -> (i32, i32) {
    %c0_i32 = arith.constant 0 : i32
    %c0_i32_0 = arith.constant 0 : i32
    %c0_i32_1 = arith.constant 0 : i32
    return %c0_i32, %c0_i32_0 : i32, i32
  }
  func.func @transform_4(%arg0: i32, %arg1: i32) -> (i32, i32) {
    %c0_i32 = arith.constant 0 : i32
    %c0_i32_0 = arith.constant 0 : i32
    %c0_i32_1 = arith.constant 0 : i32
    return %c0_i32, %c0_i32_0 : i32, i32
  }
  func.func @transform_5(%arg0: i32, %arg1: i32) -> (i32, i32, i32) {
    %c0_i32 = arith.constant 0 : i32
    %c0_i32_0 = arith.constant 0 : i32
    %c0_i32_1 = arith.constant 0 : i32
    return %arg1, %c0_i32, %c0_i32_0 : i32, i32, i32
  }
  func.func @transform_6(%arg0: i32, %arg1: i32) -> (i32, i32, i32) {
    %c0_i32 = arith.constant 0 : i32
    %c0_i32_0 = arith.constant 0 : i32
    %c0_i32_1 = arith.constant 0 : i32
    return %arg1, %c0_i32, %c0_i32_0 : i32, i32, i32
  }
  func.func @transform_7(%arg0: i32, %arg1: i32) -> (i32, i32, i32) {
    %c0_i32 = arith.constant 0 : i32
    %c0_i32_0 = arith.constant 0 : i32
    %c0_i32_1 = arith.constant 0 : i32
    return %arg1, %c0_i32, %c0_i32_0 : i32, i32, i32
  }
  func.func @transform_8(%arg0: i32, %arg1: i32) -> (i32, i32, i32) {
    %c0_i32 = arith.constant 0 : i32
    %c0_i32_0 = arith.constant 0 : i32
    %c0_i32_1 = arith.constant 0 : i32
    return %arg1, %c0_i32, %c0_i32_0 : i32, i32, i32
  }
  func.func @transform_9(%arg0: i32, %arg1: i32) -> (i32, i32, i32) {
    %c0_i32 = arith.constant 0 : i32
    %c0_i32_0 = arith.constant 0 : i32
    %c0_i32_1 = arith.constant 0 : i32
    return %arg1, %c0_i32, %c0_i32_0 : i32, i32, i32
  }
  func.func @transform_10(%arg0: i32, %arg1: i32) -> (i32, i32, i32) {
    %c0_i32 = arith.constant 0 : i32
    %c0_i32_0 = arith.constant 0 : i32
    %c0_i32_1 = arith.constant 0 : i32
    return %arg1, %c0_i32, %c0_i32_0 : i32, i32, i32
  }
  func.func @transform_11(%arg0: i32, %arg1: i32) -> (i32, i32, i32) {
    %c0_i32 = arith.constant 0 : i32
    %c0_i32_0 = arith.constant 0 : i32
    %c0_i32_1 = arith.constant 0 : i32
    return %arg1, %c0_i32, %c0_i32_0 : i32, i32, i32
  }
  func.func @transform_12(%arg0: i32, %arg1: i32) -> (i32, i32, i32) {
    %c0_i32 = arith.constant 0 : i32
    %c0_i32_0 = arith.constant 0 : i32
    %c0_i32_1 = arith.constant 0 : i32
    return %arg1, %c0_i32, %c0_i32_0 : i32, i32, i32
  }
  func.func @transform_13(%arg0: i32, %arg1: i32) -> (i32, i32, i32) {
    %c0_i32 = arith.constant 0 : i32
    %c0_i32_0 = arith.constant 0 : i32
    %c0_i32_1 = arith.constant 0 : i32
    return %arg1, %c0_i32, %c0_i32_0 : i32, i32, i32
  }
  func.func @transform_14(%arg0: i32, %arg1: i32) -> (i32, i32, i32) {
    %c0_i32 = arith.constant 0 : i32
    %c0_i32_0 = arith.constant 0 : i32
    %c0_i32_1 = arith.constant 0 : i32
    return %arg1, %c0_i32, %c0_i32_0 : i32, i32, i32
  }
  func.func @transform_15(%arg0: i32, %arg1: i32) -> (i32, i32, i32) {
    %c0_i32 = arith.constant 0 : i32
    %c0_i32_0 = arith.constant 0 : i32
    %c0_i32_1 = arith.constant 0 : i32
    return %arg1, %c0_i32, %c0_i32_0 : i32, i32, i32
  }
  func.func @transform_16(%arg0: i32, %arg1: i32) -> (i32, i32, i32) {
    %c0_i32 = arith.constant 0 : i32
    %c0_i32_0 = arith.constant 0 : i32
    %c0_i32_1 = arith.constant 0 : i32
    return %arg1, %c0_i32, %c0_i32_0 : i32, i32, i32
  }
  func.func @transform_17(%arg0: i32, %arg1: i32) -> (i32, i32, i32) {
    %c0_i32 = arith.constant 0 : i32
    %c0_i32_0 = arith.constant 0 : i32
    %c0_i32_1 = arith.constant 0 : i32
    return %arg1, %c0_i32, %c0_i32_0 : i32, i32, i32
  }
  func.func @transform_18(%arg0: i32, %arg1: i32) -> (i32, i32) {
    %c0_i32 = arith.constant 0 : i32
    %c0_i32_0 = arith.constant 0 : i32
    %c0_i32_1 = arith.constant 0 : i32
    return %c0_i32, %c0_i32_0 : i32, i32
  }
  func.func @transform_19(%arg0: i32, %arg1: i32) -> (i32, i32) {
    %c0_i32 = arith.constant 0 : i32
    %c0_i32_0 = arith.constant 0 : i32
    %c0_i32_1 = arith.constant 0 : i32
    return %c0_i32, %c0_i32_0 : i32, i32
  }
  func.func @transform_20(%arg0: i32, %arg1: i32) -> (i32, i32) {
    %c0_i32 = arith.constant 0 : i32
    %c0_i32_0 = arith.constant 0 : i32
    %c0_i32_1 = arith.constant 0 : i32
    return %c0_i32, %c0_i32_0 : i32, i32
  }
  func.func @transform_21(%arg0: i32, %arg1: i32) -> (i32, i32) {
    %c0_i32 = arith.constant 0 : i32
    %c0_i32_0 = arith.constant 0 : i32
    %c0_i32_1 = arith.constant 0 : i32
    return %c0_i32, %c0_i32_0 : i32, i32
  }
  func.func @transform_22(%arg0: i32, %arg1: i32) -> (i32, i32, i32) {
    %c0_i32 = arith.constant 0 : i32
    %c0_i32_0 = arith.constant 0 : i32
    %c0_i32_1 = arith.constant 0 : i32
    return %arg0, %c0_i32, %c0_i32_0 : i32, i32, i32
  }
}

</mosaic_0001>

<bundles_post_ra>
// kernel: forward.1
= control target key start
LH: loop header
LB: loop body
LE: loop exit
PB: predicated region body
PF: predicated region fallthrough
CT: control target
= control target key end

     0   :  { %s4691_s28 = smov 0   ;;  %s4693_s29 = smov 0   ;;  %s5483_s0 = inlined_call_operand.vmem [shape: f32[2,24,48], index: 0, kind: input, shape index: {}]   ;;  %s5484_s1 = inlined_call_operand.vmem [shape: bf16[48,128], index: 1, kind: input, shape index: {}]   ;;  %s5485_s2 = inlined_call_operand.vmem [shape: f32[1,128], index: 2, kind: input, shape index: {}]   ;;  %s5486_s3 = inlined_call_operand.vmem [shape: f32[1,128], index: 3, kind: input, shape index: {}]   ;;  %s5487_s4 = inlined_call_operand.vmem [shape: f32[24,128], index: 4, kind: input, shape index: {}]   ;;  %s5488_s5 = inlined_call_operand.vmem [shape: f32[2,24,128], index: 5, kind: input, shape index: {}]   ;;  %s5489_s6 = inlined_call_operand.vmem [shape: f32[2,1,128], index: 6, kind: input, shape index: {}]   ;;  %s5490_s7 = inlined_call_operand.vmem [shape: f32[2,1,128], index: 7, kind: input, shape index: {}]   ;;  %s5491_s8 = inlined_call_operand.vmem [shape: bf16[2,128,384], index: 8, kind: input, shape index: {}]   ;;  %s5492_s9 = inlined_call_operand.vmem [shape: f32[2,1,384], index: 9, kind: input, shape index: {}]   ;;  %s5493_s10 = inlined_call_operand.vmem [shape: bf16[2,128,128], index: 10, kind: input, shape index: {}]   ;;  %s5494_s11 = inlined_call_operand.vmem [shape: f32[2,1,128], index: 11, kind: input, shape index: {}]   ;;  %s5495_s12 = inlined_call_operand.vmem [shape: f32[2,1,128], index: 12, kind: input, shape index: {}]   ;;  %s5496_s13 = inlined_call_operand.vmem [shape: f32[2,1,128], index: 13, kind: input, shape index: {}]   ;;  %s5497_s14 = inlined_call_operand.vmem [shape: bf16[2,128,512], index: 14, kind: input, shape index: {}]   ;;  %s5498_s15 = inlined_call_operand.vmem [shape: f32[2,1,512], index: 15, kind: input, shape index: {}]   ;;  %s5499_s16 = inlined_call_operand.vmem [shape: bf16[2,512,128], index: 16, kind: input, shape index: {}]   ;;  %s5500_s17 = inlined_call_operand.vmem [shape: f32[2,1,128], index: 17, kind: input, shape index: {}]   ;;  %s5501_s18 = inlined_call_operand.vmem [shape: f32[1,128], index: 18, kind: input, shape index: {}]   ;;  %s5502_s19 = inlined_call_operand.vmem [shape: f32[1,128], index: 19, kind: input, shape index: {}]   ;;  %s5503_s20 = inlined_call_operand.vmem [shape: bf16[128,128], index: 20, kind: input, shape index: {}]   ;;  %s5504_s21 = inlined_call_operand.vmem [shape: f32[1,128], index: 21, kind: input, shape index: {}]   ;;  %s5505_s22 = inlined_call_operand.vmem [shape: f32[2,8,128], index: 22, kind: output, shape index: {}]  }
   0x1   :  { %5513 = sst [smem:[#allocation9_spill]] %s5483_s0  ;;  %s4695_s30 = smov 0  }
   0x2   :  { %5514 = sst [smem:[#allocation10_spill]] %s5484_s1 }
   0x3   :  { %5515 = sst [smem:[#allocation11_spill]] %s5485_s2 }
   0x4   :  { %5516 = sst [smem:[#allocation12_spill]] %s5486_s3  ;;  %s4689_s3 = smov 0  }
   0x5   :  { %5517 = sst [smem:[#allocation13_spill]] %s5487_s4  ;;  %s4697_s4 = smov 0  }
   0x6   :  { %5518 = sst [smem:[#allocation14_spill]] %s5488_s5 }
   0x7   :  { %5519 = sst [smem:[#allocation15_spill]] %s5489_s6 }
   0x8   :  { %5520 = sst [smem:[#allocation16_spill]] %s5491_s8 }
   0x9   :  { %5521 = sst [smem:[#allocation17_spill]] %s5492_s9 }
   0xa   :  { %5522 = sst [smem:[#allocation18_spill]] %s5493_s10 }
   0xb   :  { %5523 = sst [smem:[#allocation19_spill]] %s5496_s13 }
   0xc   :  { %5524 = sst [smem:[#allocation20_spill]] %s5497_s14 }
   0xd   :  { %5525 = sst [smem:[#allocation21_spill]] %s5499_s16 }
   0xe   :  { %5526 = sst [smem:[#allocation22_spill]] %s5500_s17 }
   0xf   :  { %5527 = sst [smem:[#allocation23_spill]] %s5501_s18 }
  0x10   :  { %5528 = sst [smem:[#allocation24_spill]] %s5502_s19 }
  0x11   :  { %5529 = sst [smem:[#allocation25_spill]] %s5503_s20 }
  0x12   :  { %5530 = sst [smem:[#allocation26_spill]] %s5504_s21 }
  0x13   :  { %5531 = sst [smem:[#allocation27_spill]] %s5505_s22 }
  0x14 LB: > { %5532 = sst [smem:[#allocation3_spill]] %s4548_s3  ;;  %s41_s0 = sadd.s32 1, %s4556_s29  ;;  %s4564_s4 = sphi %s4697_s4, %s32_s4   ;;  %s4560_s30 = sphi %s4695_s30, %s5573_s30   ;;  %s4556_s29 = sphi %s4693_s29, %s5572_s29   ;;  %s4552_s28 = sphi %s4691_s28, %s5571_s28   ;;  %s4548_s3 = sphi %s4689_s3, %s5570_s3  }
  0x15   : > { %5533 = sst [smem:[#allocation4_spill]] %s4556_s29  ;;  %s44_s23 = sadd.s32 1, %s4560_s30 }
  0x16   : > { %5534 = sst [smem:[#allocation5_spill]] %s4560_s30  ;;  %p42_p0 = scmp.ge.s32.totalorder %s41_s0, 2 }
  0x17   : > { %5535 = sst [smem:[#allocation6_spill]] %s4564_s4  ;;  %p3785_p1 = scmp.ge.s32.totalorder %s4564_s4, 1 }
  0x18   : > { %p740_p2 = scmp.lt.s32.totalorder %s4564_s4, 5  ;;  %s5575_s0 = smov (%p42_p0, %s41_s0), 0 }
  0x19   : > { %5536 = sst [smem:[#allocation7_spill]] %s5575_s0  ;;  %s5577_s23 = smov (!%p42_p0, %s44_s23), %s4560_s30 }
  0x1a   : > { %p741_p3 = pnand %p3785_p1, %p740_p2  ;;  %p46_p4 = scmp.ge.s32.totalorder %s5577_s23, 2 }
  0x1b   : > { %p852_p5 = scmp.lt.s32.totalorder (!%p741_p3), %s4552_s28, 1  ;;  %p857_p6 = scmp.lt.s32.totalorder (!%p741_p3), %s4548_s3, 1  ;;  %v913_v0 = vlaneseq (!%p741_p3) }
  0x1c   : > { %s5579_s23 = smov (%p46_p4, %s5577_s23), 0  ;;  %744 = sbr.rel (%p741_p3) target bundleno = 4714 (0x126a), region = 108 }
  0x1d   : > { %5537 = sst [smem:[#allocation8_spill]] %s5579_s23  ;;  %v4723_v1 = vshrl.u32 (!%p741_p3), %v913_v0, 7  ;;  %s5539_s30 = sld [smem:[#allocation9_spill]] (!%p741_p3) }
  0x1e   : > { %s5540_s20 = sld [smem:[#allocation14_spill]] (!%p741_p3)  ;;  %s5541_s8 = sld [smem:[#allocation16_spill]] (!%p741_p3) }
  0x1f   : > { %v4729_v2 = vadd.s32 (!%p741_p3), 16, %v4723_v1  ;;  %s5542_s10 = sld [smem:[#allocation18_spill]] (!%p741_p3)  ;;  %s5543_s9 = sld [smem:[#allocation17_spill]] (!%p741_p3) }
  0x20   : > { %s5545_s14 = sld [smem:[#allocation20_spill]] (!%p741_p3)  ;;  %s5546_s19 = sld [smem:[#allocation21_spill]] (!%p741_p3) }
  0x21   : > { %s5547_s26 = sld [smem:[#allocation22_spill]] (!%p741_p3)  ;;  %s5548_s13 = sld [smem:[#allocation27_spill]] (!%p741_p3) }
  0x22   : > { %s5549_s0 = sld [smem:[#allocation3_spill]] (!%p741_p3) }
  0x23   : > { %s5581_s28 = smov (!%p852_p5, %s4552_s28), 1 }
  0x24   : > { %s4726_s1 = scalar_select %p857_p6, %s4548_s3, 1 }
  0x25   : > { %s4231_s5 = smul.u32 24, %s5581_s28  ;;  %s3796_s24 = sshll.u32 %s5581_s28, 3 }
  0x26   : > { %s4232_s6 = smul.u32 24, %s4726_s1  ;;  %s3942_s16 = sshll.u32 %s4726_s1, 6 }
  0x27   : > { %s4739_s29 = scalar_lea.vmem %s5539_s30, %s4231_s5  ;;  %s4233_s22 = smul.u32 192, %s4726_s1 }
  0x28   : > { %s4748_s3 = scalar_lea.vmem %s5540_s20, %s4232_s6  ;;  %s4234_s17 = smul.u32 3, %s4726_s1 }
  0x29   : > { %s4756_s2 = scalar_lea.vmem %s5541_s8, %s4233_s22  ;;  %s4761_s23 = scalar_lea.vmem %s5542_s10, %s3942_s16 }
  0x2a   : > { %s4766_s18 = scalar_lea.vmem %s5543_s9, %s4234_s17  ;;  %s3943_s30 = sshll.u32 %s4726_s1, 8 }
  0x2b   : > { %s3793_s16 = sshll.u32 %s4726_s1, 2  ;;  %s4785_s21 = scalar_lea.vmem %s5545_s14, %s3943_s30 }
  0x2c   : > { %s4790_s20 = scalar_lea.vmem %s5498_s15, %s3793_s16  ;;  %s4795_s28 = scalar_lea.vmem %s5546_s19, %s3943_s30 }
  0x2d   : > { %s907_s27 = scalar_lea.vmem %s5547_s26, %s4726_s1  ;;  %s4804_s8 = scalar_lea.vmem %s5548_s13, %s3796_s24 }
  0x2e   : > { %p3797_p7 = scmp.ne.s32.totalorder %s5549_s0, 0 }
  0x2f   : > { %s5550_s4 = sld [smem:[#allocation10_spill]] (!%p3797_p7)  ;;  %v921_v5 = vld [vmem:[%s4739_s29] sm:$0xff] (!%p3797_p7)  ;;  %v922_v6 = vld [vmem:[%s4739_s29 + $0x8] sm:$0xff] (!%p3797_p7)  ;;  %vm957_vm0 = vcmask (!%p3797_p7), 392192   ;;  %v923_v9 = vld [vmem:[%s4739_s29 + $0x10] sm:$0xff] (!%p3797_p7)  ;;  %s5552_s25 = sld [smem:[#allocation11_spill]] (!%p3797_p7) }
  0x30   : > { %920 = sbr.rel (%p3797_p7) target bundleno = 286 (0x11e), region = 112  ;;  %v931_v8 = vpack.c.bf16 (!%p3797_p7), %v922_v6, %v921_v5  ;;  %v932_v10 = vpack.c.bf16 (!%p3797_p7), %v923_v9, %v923_v9  ;;  %vm1033_vm1 = vcmp.ge.s32.totalorder (!%p3797_p7), %v4729_v2, 17  ;;  %s5553_s22 = sld [smem:[#allocation13_spill]] (!%p3797_p7)  ;;  %vm1012_vm2 = vcmp.eq.s32.totalorder (!%p3797_p7), %v4723_v1, 0 }
  0x31   : > { %s5554_s0 = sld [smem:[#allocation12_spill]] (!%p3797_p7) }
  0x32   : > { %4079 = vmatprep.mubr.msk.bf16.mxu0 (!%p3797_p7), %vm957_vm0, %v931_v8 }
  0x35   : > { %s5551_s14 = smov (!%p3797_p7), %s5550_s4  ;;  %v4283_v3 = vld [vmem:[%s5550_s4] sm:$0xff] (!%p3797_p7)  }
  0x36   : > { %v4284_v4 = vld [vmem:[%s5551_s14 + $0x8] sm:$0xff] (!%p3797_p7)   ;;  %4073 = vmatprep.subr.bf16.mxu0 (!%p3797_p7), %v4283_v3  ;;  %v4285_v7 = vld [vmem:[%s5551_s14 + $0x10] sm:$0xff] (!%p3797_p7)   ;;  %v3798_v11 = vld [vmem:[%s5552_s25] ss:$0 sm:$0xff] (!%p3797_p7) }
  0x37   : > { %4074 = vmatpush3.bf16.msra.mxu0 %v4283_v3  ;;  %v1045_v14 = vld [vmem:[%s5553_s22 + $0x10] sm:$0xff]  ;;  %v3804_v16 = vld [vmem:[%s5554_s0] ss:$0 sm:$0xff]  ;;  %v1044_v22 = vld [vmem:[%s5553_s22 + $0x8] sm:$0xff] }
  0x38   : > { %4075 = vmatprep.subr.bf16.mxu0 %v4284_v4  ;;  %v1043_v18 = vld [vmem:[%s5553_s22] sm:$0xff] }
  0x3b   : > { %4076 = vmatpush3.bf16.msra.mxu0 %v4284_v4 }
  0x3c   : > { %4077 = vmatprep.subr.bf16.mxu0 %v4285_v7 }
  0x3f   : > { %4078 = vmatpush3.bf16.msra.mxu0 %v4285_v7 }
  0x42   : > { %4080 = vmatmul.mubr.msk.bf16.vlgmr.msra.gmra.mrb[0].mxu0 %vm957_vm0, %v932_v10 }
 0x115   : > { %v4081_v12 = vpop.f32.mrb[0].mxu0 }
 0x116   : > { %v1007_v13 = vadd.f32 %v4081_v12, %v3798_v11  ;;  %v998_v15 = vpop.f32.mrb[1].mxu0 }
 0x117   : > { %v999_v17 = vadd.f32 %v3798_v11, %v998_v15  ;;  %v4082_v19 = vpop.f32.mrb[2].mxu0 }
 0x118   : > { %v1042_v20 = vsel %vm1033_vm1, 0.0, %v1007_v13  ;;  %v1001_v21 = vpop.f32.mrb[3].mxu0 }
 0x119   : > { %v1048_v23 = vadd.f32 %v1045_v14, %v1042_v20  ;;  %v1028_v24 = vsel %vm1012_vm2, %v3804_v16, %v999_v17  ;;  %v1002_v25 = vadd.f32 %v3798_v11, %v1001_v21 }
 0x11a   : > { %v1046_v26 = vadd.f32 %v1043_v18, %v1028_v24 }
 0x11b   : > { %1051 = vst [vmem:[#allocation2 + $0x10] sm:$0xff] %v1048_v23  ;;  %v1047_v27 = vadd.f32 %v1044_v22, %v1002_v25 }
 0x11c   : > { %1049 = vst [vmem:[#allocation2] sm:$0xff] %v1046_v26 }
 0x11d   : > { %1050 = vst [vmem:[#allocation2 + $0x8] sm:$0xff] %v1047_v27 }
 0x11e PF: > { %vm1057_vm3 = vcmp.ge.s32.totalorder %v4729_v2, 17  ;;  %v1060_v30 = vld [vmem:[%s4748_s3 + $0x10] sm:$0xff]  ;;  %v4288_v34 = vld [vmem:[%s4756_s2] ss:$12 sps:$4 sm:$0xff]   ;;  %v4290_v36 = vld [vmem:[%s4756_s2 + $0x1c] ss:$12 sps:$4 sm:$0xff]   ;;  %s5557_s24 = scalar_lea.vmem %s5490_s7, %s4726_s1  ;;  %s5558_s29 = scalar_lea.vmem %s5494_s11, %s4726_s1 }
 0x11f   : > { %v4286_v33 = vld [vmem:[%s4756_s2 + $0x4] ss:$12 sps:$4 sm:$0xff]   ;;  %v4289_v35 = vld [vmem:[%s4756_s2 + $0x8] ss:$12 sps:$4 sm:$0xff]   ;;  %v4293_v50 = vld [vmem:[%s4756_s2 + $0x20] ss:$12 sps:$4 sm:$0xff]   ;;  %s5559_s0 = scalar_lea.vmem %s5495_s12, %s4726_s1 }
 0x120   : > { %1303 = vmatprep.subr.bf16.mxu0 %v4286_v33  ;;  %4083 = vmatprep.subr.bf16.mxu1 %v4289_v35  ;;  %v4292_v49 = vld [vmem:[%s4756_s2 + $0x18] ss:$12 sps:$4 sm:$0xff]   ;;  %v4294_v51 = vld [vmem:[%s4756_s2 + $0x34] ss:$12 sps:$4 sm:$0xff]   ;;  %v4296_v52 = vld [vmem:[%s4756_s2 + $0x30] ss:$12 sps:$4 sm:$0xff]  }
 0x121   : > { %1304 = vmatpush1.bf16.msra.mxu0 %v4288_v34  ;;  %4084 = vmatpush3.bf16.msra.mxu1 %v4289_v35  ;;  %v4297_v53 = vld [vmem:[%s4756_s2 + $0x38] ss:$12 sps:$4 sm:$0xff]   ;;  %v4300_v55 = vld [vmem:[%s4756_s2 + $0x48] ss:$12 sps:$4 sm:$0xff]   ;;  %v4301_v56 = vld [vmem:[%s4756_s2 + $0x50] ss:$12 sps:$4 sm:$0xff]  }
 0x122   : > { %v1054_v29 = vld [vmem:[#allocation2 + $0x10] sm:$0xff]  ;;  %1305 = vmatprep.subr.bf16.mxu0 %v4290_v36  ;;  %4085 = vmatprep.subr.bf16.mxu1 %v4293_v50  ;;  %v4298_v54 = vld [vmem:[%s4756_s2 + $0x4c] ss:$12 sps:$4 sm:$0xff]   ;;  %v4306_v60 = vld [vmem:[%s4756_s2 + $0x7c] ss:$12 sps:$4 sm:$0xff]   ;;  %v4566_v3 = vmov 0  }
 0x123   : > { %v1052_v28 = vld [vmem:[#allocation2] sm:$0xff]  ;;  %v4838_v31 = vsel %vm1057_vm3, %v1060_v30, %v1054_v29  ;;  %v4305_v59 = vld [vmem:[%s4756_s2 + $0x68] ss:$12 sps:$4 sm:$0xff]   ;;  %1335 = vmatprep.mubr.bf16.mxu0 %v4566_v3  ;;  %v4312_v4 = vld [vmem:[%s4756_s2 + $0x90] ss:$12 sps:$4 sm:$0xff]   ;;  %s5555_s30 = sld [smem:[#allocation15_spill]] }
 0x124   : > { %1072 = vadd.xlane.f32.xlu0 %v1052_v28  ;;  %v1053_v32 = vld [vmem:[#allocation2 + $0x8] sm:$0xff]  ;;  %1076 = vadd.xlane.f32.xlu1 %v4838_v31  ;;  %v4302_v57 = vld [vmem:[%s4756_s2 + $0x64] ss:$12 sps:$4 sm:$0xff]   ;;  %v4310_v63 = vld [vmem:[%s4756_s2 + $0x94] ss:$12 sps:$4 sm:$0xff]   ;;  %v4894_v34 = vsub.s32 0, %v4723_v1 }
 0x125   : > { %1306 = vmatpush1.bf16.msra.mxu0 %v4292_v49  ;;  %4086 = vmatpush3.bf16.msra.mxu1 %v4293_v50  ;;  %v4304_v58 = vld [vmem:[%s4756_s2 + $0x60] ss:$12 sps:$4 sm:$0xff]   ;;  %v4308_v62 = vld [vmem:[%s4756_s2 + $0x78] ss:$12 sps:$4 sm:$0xff]   ;;  %v4317_v6 = vld [vmem:[%s4756_s2 + $0xb0] ss:$12 sps:$4 sm:$0xff]  }
 0x126   : > { %1307 = vmatprep.subr.bf16.mxu0 %v4294_v51  ;;  %4087 = vmatprep.subr.bf16.mxu1 %v4297_v53  ;;  %v4309_v61 = vld [vmem:[%s4756_s2 + $0x80] ss:$12 sps:$4 sm:$0xff]   ;;  %v4313_v2 = vld [vmem:[%s4756_s2 + $0x98] ss:$12 sps:$4 sm:$0xff]   ;;  %v4316_v7 = vld [vmem:[%s4756_s2 + $0xa8] ss:$12 sps:$4 sm:$0xff]  }
 0x127   : > { %v4314_v5 = vld [vmem:[%s4756_s2 + $0xac] ss:$12 sps:$4 sm:$0xff]   ;;  %v3806_v25 = vld [vmem:[%s5557_s24] ss:$0 sm:$0xff]  ;;  %v1166_v36 = vsub.s32 1, %v4723_v1  ;;  %vm1431_vm4 = vcmask 261120  }
 0x128   : > { %1074 = vadd.xlane.f32.xlu0 %v1053_v32  ;;  %v1156_v35 = vld [vmem:[%s4766_s18] sm:$0x7]  ;;  %vm1534_vm5 = vcmask 1043456   ;;  %vm1492_vm7 = vcmask 195584   ;;  %s4568_s18 = smov 96   ;;  %s4569_s25 = smov 64  }
 0x129   : > { %1308 = vmatpush1.bf16.msra.mxu0 %v4296_v52  ;;  %4088 = vmatpush3.bf16.msra.mxu1 %v4297_v53  ;;  %s5556_s9 = scalar_lea.vmem %s5555_s30, %s4726_s1  ;;  %s4570_s5 = smov 32  }
 0x12a   : > { %1309 = vmatprep.subr.bf16.mxu0 %v4298_v54  ;;  %4089 = vmatprep.subr.bf16.mxu1 %v4301_v56  ;;  %v3805_v19 = vld [vmem:[%s5556_s9] ss:$0 sm:$0xff]  ;;  %s5560_s4 = sld [smem:[#allocation19_spill]] }
 0x12d   : > { %1310 = vmatpush1.bf16.msra.mxu0 %v4300_v55  ;;  %4090 = vmatpush3.bf16.msra.mxu1 %v4301_v56 }
 0x12e   : > { %1311 = vmatprep.subr.bf16.mxu0 %v4302_v57  ;;  %4091 = vmatprep.subr.bf16.mxu1 %v4305_v59 }
 0x130   : > { %s5561_s6 = scalar_lea.vmem %s5560_s4, %s4726_s1  ;;  %s5563_s1 = sld [smem:[#allocation3_spill]] }
 0x131   : > { %1312 = vmatpush1.bf16.msra.mxu0 %v4304_v58  ;;  %4092 = vmatpush3.bf16.msra.mxu1 %v4305_v59 }
 0x132   : > { %1313 = vmatprep.subr.bf16.mxu0 %v4306_v60  ;;  %4093 = vmatprep.subr.bf16.mxu1 %v4309_v61 }
 0x135   : > { %1314 = vmatpush1.bf16.msra.mxu0 %v4308_v62  ;;  %4094 = vmatpush3.bf16.msra.mxu1 %v4309_v61 }
 0x136   : > { %1315 = vmatprep.subr.bf16.mxu0 %v4310_v63  ;;  %4095 = vmatprep.subr.bf16.mxu1 %v4313_v2  ;;  %p3931_p8 = scmp.ne.s32.totalorder %s5563_s1, 1 }
 0x137   : > { %s5564_s30 = sld [smem:[#allocation25_spill]] (!%p3931_p8)  ;;  %s5567_s1 = sld [smem:[#allocation24_spill]] (!%p3931_p8) }
 0x139   : > { %1316 = vmatpush1.bf16.msra.mxu0 %v4312_v4  ;;  %4096 = vmatpush3.bf16.msra.mxu1 %v4313_v2 }
 0x13a   : > { %1317 = vmatprep.subr.bf16.mxu0 %v4314_v5  ;;  %4097 = vmatprep.subr.bf16.mxu1 %v4317_v6 }
 0x13d   : > { %1318 = vmatpush1.bf16.msra.mxu0 %v4316_v7  ;;  %4098 = vmatpush3.bf16.msra.mxu1 %v4317_v6  ;;  %s5565_s9 = smov (!%p3931_p8), %s5564_s30 }
 0x1b1   : > { %v1073_v37 = vpop.xlane.xlu0 %1072  ;;  %v1077_v39 = vpop.xlane.xlu1 %1076 }
 0x1b2   : > { %v1079_v38 = vmul.f32 0.0078125, %v1073_v37  ;;  %v1081_v40 = vmul.f32 0.0078125, %v1077_v39  ;;  %v1163_v37 = vrot.slane %v1156_v35, %v4894_v34 }
 0x1b4   : > { %v4845_v41 = vsub.f32 %v1052_v28, %v1079_v38  ;;  %v4848_v42 = vsub.f32 %v4838_v31, %v1081_v40  ;;  %v1170_v38 = vsub.s32 2, %v4723_v1  ;;  %v1167_v40 = vrot.slane %v1156_v35, %v1166_v36 }
 0x1b5   : > { %v1075_v43 = vpop.xlane.xlu0 %1074 }
 0x1b6   : > { %v1080_v44 = vmul.f32 0.0078125, %v1075_v43  ;;  %v1085_v45 = vmul.f32 %v4845_v41, %v4845_v41  ;;  %v1087_v47 = vmul.f32 %v4848_v42, %v4848_v42  ;;  %v1171_v43 = vrot.slane %v1156_v35, %v1170_v38 }
 0x1b8   : > { %v4852_v46 = vsub.f32 %v1053_v32, %v1080_v44  ;;  %1088 = vadd.xlane.f32.xlu1 %v1085_v45 }
 0x1ba   : > { %v1086_v48 = vmul.f32 %v4852_v46, %v4852_v46 }
 0x1bc   : > { %1092 = vadd.xlane.f32.xlu1 %v1087_v47  ;;  %1090 = vadd.xlane.f32.xlu0 %v1086_v48 }
 0x245   : > { %v1089_v8 = vpop.xlane.xlu1 %1088 }
 0x246   : > { %v1094_v9 = vmul.f32 0.0078125, %v1089_v8 }
 0x248   : > { %v1097_v10 = vadd.f32 1e-06, %v1094_v9 }
 0x249   : > { %v1093_v11 = vpop.xlane.xlu1 %1092  ;;  %v1091_v12 = vpop.xlane.xlu0 %1090 }
 0x24a   : > { %4406 = vrsqrt.f32 %v1097_v10  ;;  %v1096_v13 = vmul.f32 0.0078125, %v1093_v11  ;;  %v1095_v14 = vmul.f32 0.0078125, %v1091_v12 }
 0x24c   : > { %v1099_v15 = vadd.f32 1e-06, %v1096_v13  ;;  %v1098_v16 = vadd.f32 1e-06, %v1095_v14  ;;  %v1403_v13 = vand.u32 127, %v913_v0 }
 0x24d   : > { %v4567_v14 = vmov -1e+30  }
 0x24e   : > { %4408 = vrsqrt.f32 %v1099_v15  ;;  %vm1404_vm6 = vcmp.lt.s32.totalorder %v1403_v13, 19 }
 0x24f   : > { %4410 = vrsqrt.f32 %v1098_v16  ;;  %v4935_v15 = vsel %vm1404_vm6, 0.0, %v4567_v14 }
 0x254   : > { %v4407_v17 = vpop.eup %4406 }
 0x255   : > { %v1103_v18 = vmul.f32 %v4407_v17, %v4845_v41 }
 0x257   : > { %v1112_v24 = vmul.f32 %v3805_v19, %v1103_v18 }
 0x258   : > { %v4409_v20 = vpop.eup %4408 }
 0x259   : > { %v4411_v21 = vpop.eup %4410  ;;  %v1105_v22 = vmul.f32 %v4409_v20, %v4848_v42  ;;  %v1121_v29 = vadd.f32 %v3806_v25, %v1112_v24 }
 0x25a   : > { %v1104_v23 = vmul.f32 %v4411_v21, %v4852_v46 }
 0x25b   : > { %v1114_v26 = vmul.f32 %v3805_v19, %v1105_v22 }
 0x25c   : > { %v1113_v27 = vmul.f32 %v3805_v19, %v1104_v23 }
 0x25d   : > { %v1123_v28 = vadd.f32 %v3806_v25, %v1114_v26 }
 0x25e   : > { %v1122_v30 = vadd.f32 %v3806_v25, %v1113_v27 }
 0x25f   : > { %v1158_v32 = vpack.c.bf16 %v1123_v28, %v1123_v28 }
 0x260   : > { %v1157_v33 = vpack.c.bf16 %v1122_v30, %v1121_v29 }
 0x262   : > { %1336 = vmatmul.mubr.bf16.vlgmr.msra.gmra.mrb[0].mxu0 %v1157_v33  ;;  %4099 = vmatprep.mubr.bf16.mxu1 %v1157_v33 }
 0x263   : > { %4100 = vmatmul.mubr.bf16.vlgmr.msra.gmra.mrb[0].mxu1 %v1158_v32  ;;  %1345 = vmatprep.mubr.bf16.mxu0 %v4566_v3 }
 0x26a   : > { %1346 = vmatmul.mubr.bf16.gmra.mrb[4].mxu0 %v1158_v32 }
 0x335   : > { %v1337_v39 = vpop.f32.mrb[0].mxu0 }
 0x336   : > { %v1338_v41 = vadd.f32 %v1337_v39, %v1163_v37  ;;  %v1339_v42 = vpop.f32.mrb[1].mxu0  ;;  %v4101_v44 = vpop.f32.mrb[0].mxu1 }
 0x337   : > { %v1341_v45 = vpop.f32.mrb[2].mxu0  ;;  %v1388_v46 = vpop.f32.mrb[1].mxu1  ;;  %v1340_v50 = vadd.f32 %v1339_v42, %v1167_v40  ;;  %v1397_v57 = vadd.f32 %v4101_v44, %v1171_v43 }
 0x338   : > { %v1342_v47 = vadd.f32 %v1341_v45, %v1163_v37  ;;  %v1343_v48 = vpop.f32.mrb[3].mxu0  ;;  %v4102_v49 = vpop.f32.mrb[2].mxu1  ;;  %v1406_v53 = vmul.f32 0.17677669, %v1338_v41  ;;  %v1389_v55 = vadd.f32 %v1388_v46, %v1171_v43 }
 0x339   : > { %v1344_v51 = vadd.f32 %v1343_v48, %v1167_v40  ;;  %v1391_v52 = vpop.f32.mrb[3].mxu1  ;;  %v4916_v2 = vpack.c.bf16 %v1397_v57, %v1397_v57 }
 0x33a   : > { %v1407_v54 = vmul.f32 0.17677669, %v1342_v47  ;;  %v1392_v56 = vadd.f32 %v1391_v52, %v1171_v43 }
 0x33b   : > { %v4904_v58 = vpack.c.bf16 %v1344_v51, %v1340_v50  ;;  %v1536_v9 = vsel %vm1534_vm5, %v4916_v2, 0 }
 0x33c   : > { %v4906_v59 = vpack.c.bf16 %v1407_v54, %v1406_v53  ;;  %v4908_v60 = vpack.c.bf16 %v1392_v56, %v1389_v55 }
 0x33d   : > { %v1347_v61 = vpop.f32.mrb[4].mxu0  ;;  %4219 = vmatprep.subr.msk.bf16.mxu0 %vm1431_vm4, %v4904_v58  ;;  %v1439_v62 = vsel %vm1431_vm4, %v4904_v58, 0 }
 0x33e   : > { %v1349_v63 = vpop.f32.mrb[5].mxu0  ;;  %4104 = vmatpush3.bf16.xpose.msra.mxu0 %v1439_v62  ;;  %4107 = vmatprep.mubr.msk.bf16.mxu0 %vm1431_vm4, %v4906_v59  ;;  %v1348_v8 = vadd.f32 %v1347_v61, %v1163_v37  ;;  %v4318_v62 = vld [vmem:[%s4761_s23] sm:$0xff]  }
 0x33f   : > { %v1350_v4 = vadd.f32 %v1349_v63, %v1167_v40  ;;  %4111 = vmatprep.subr.bf16.mxu1 %v4908_v60  ;;  %v1351_v5 = vpop.f32.mrb[6].mxu0 }
 0x340   : > { %4112 = vmatpush3.bf16.msra.mxu1 %v4908_v60  ;;  %v1352_v6 = vpop.f32.mrb[7].mxu0  ;;  %v1408_v11 = vmul.f32 0.17677669, %v1348_v8  ;;  %v4319_v5 = vld [vmem:[%s4761_s23 + $0x8] sm:$0xff]  }
 0x341   : > { %v4920_v7 = vpack.c.bf16 %v1350_v4, %v1350_v4  ;;  %4221 = vmatprep.subr.msk.bf16.mxu1 %vm1534_vm5, %v4916_v2 }
 0x342   : > { %v4930_v12 = vpack.c.bf16 %v1408_v11, %v1408_v11 }
 0x343   : > { %4220 = vmatprep.subr.msk.bf16.mxu0 %vm1431_vm4, %v4920_v7  ;;  %v1442_v10 = vsel %vm1431_vm4, %v4920_v7, 0 }
 0x344   : > { %4114 = vmatpush3.bf16.msra.mxu1 %v1536_v9 }
 0x346   : > { %4106 = vmatpush3.bf16.xpose.msra.mxu0 %v1442_v10 }
 0x34d   : > { %4108 = vmatmul.mubr.msk.bf16.vlgmr.msra.gmra.mrb[8].mxu0 %vm1431_vm4, %v4930_v12 }
 0x420   : > { %v4109_v16 = vpop.f32.mrb[8].mxu0 }
 0x421   : > { %v1478_v17 = vpop.f32.mrb[9].mxu0  ;;  %v1487_v21 = vadd.f32 %v4109_v16, %v4935_v15 }
 0x422   : > { %v1479_v18 = vadd.f32 %v1478_v17, %v4935_v15  ;;  %v4110_v19 = vpop.f32.mrb[10].mxu0 }
 0x423   : > { %v1481_v20 = vpop.f32.mrb[11].mxu0  ;;  %v1499_v24 = vsel %vm1492_vm7, %v1487_v21, -inf }
 0x424   : > { %v1482_v22 = vadd.f32 %v1481_v20, %v4935_v15  ;;  %v1493_v23 = vsel %vm1492_vm7, %v1479_v18, -inf }
 0x425   : > { %1494 = vmax.xlane.f32.xlu0 %v1493_v23 }
 0x426   : > { %v1496_v0 = vsel %vm1492_vm7, %v1482_v22, -inf }
 0x427   : > { %1497 = vmax.xlane.f32.xlu1 %v1496_v0 }
 0x429   : > { %1500 = vmax.xlane.f32.xlu0 %v1499_v24 }
 0x4b2   : > { %v1495_v25 = vpop.xlane.xlu0 %1494 }
 0x4b3   : > { %v1502_v26 = vsub.f32 %v1479_v18, %v1495_v25 }
 0x4b4   : > { %v1498_v27 = vpop.xlane.xlu1 %1497 }
 0x4b5   : > { %v1505_v28 = vmul.f32 1.442695, %v1502_v26  ;;  %v1503_v29 = vsub.f32 %v1482_v22, %v1498_v27 }
 0x4b6   : > { %v1501_v30 = vpop.xlane.xlu0 %1500 }
 0x4b7   : > { %4412 = vpow2.f32 %v1505_v28  ;;  %v1507_v32 = vmul.f32 1.442695, %v1503_v29  ;;  %v1504_v33 = vsub.f32 %v1487_v21, %v1501_v30 }
 0x4b9   : > { %4414 = vpow2.f32 %v1507_v32  ;;  %v1509_v35 = vmul.f32 1.442695, %v1504_v33 }
 0x4bb   : > { %4416 = vpow2.f32 %v1509_v35 }
 0x4c1   : > { %v4413_v37 = vpop.eup %4412 }
 0x4c2   : > { %v1511_v39 = vsel %vm1492_vm7, %v4413_v37, 0.0 }
 0x4c3   : > { %v4415_v40 = vpop.eup %4414  ;;  %1512 = vadd.xlane.f32.xlu1 %v1511_v39 }
 0x4c4   : > { %v1514_v41 = vsel %vm1492_vm7, %v4415_v40, 0.0 }
 0x4c5   : > { %v4417_v42 = vpop.eup %4416  ;;  %1515 = vadd.xlane.f32.xlu0 %v1514_v41 }
 0x4c6   : > { %v1517_v43 = vsel %vm1492_vm7, %v4417_v42, 0.0 }
 0x4c7   : > { %1518 = vadd.xlane.f32.xlu1 %v1517_v43 }
 0x4d8   : > { %1598 = vrot.lane.b32.xlu1 %v4920_v7, %s4568_s18 }
 0x4db   : > { %1596 = vrot.lane.b32.xlu0 %v4904_v58, %s4568_s18 }
 0x4dc   : > { %1590 = vrot.lane.b32.xlu1 %v4906_v59, %s4568_s18 }
 0x4e0   : > { %1592 = vrot.lane.b32.xlu1 %v4930_v12, %s4568_s18 }
 0x550   : > { %v1513_v44 = vpop.xlane.xlu1 %1512 }
 0x551   : > { %4418 = vrcp.f32 %v1513_v44 }
 0x552   : > { %v1516_v45 = vpop.xlane.xlu0 %1515 }
 0x553   : > { %4420 = vrcp.f32 %v1516_v45 }
 0x554   : > { %v1519_v46 = vpop.xlane.xlu1 %1518 }
 0x555   : > { %4422 = vrcp.f32 %v1519_v46 }
 0x556   : > { %v1597_v47 = vpop.permute.xlu0 %1596 }
 0x557   : > { %4222 = vmatprep.subr.msk.bf16.mxu1 %vm1431_vm4, %v1597_v47  ;;  %v1607_v57 = vsel %vm1431_vm4, %v1597_v47, 0 }
 0x558   : > { %v1599_v50 = vpop.permute.xlu1 %1598 }
 0x559   : > { %v1610_v63 = vsel %vm1431_vm4, %v1599_v50, 0 }
 0x55b   : > { %v4419_v48 = vpop.eup %4418 }
 0x55c   : > { %v1523_v51 = vmul.f32 %v4419_v48, %v4413_v37  ;;  %v1591_v61 = vpop.permute.xlu1 %1590 }
 0x55d   : > { %v4421_v49 = vpop.eup %4420 }
 0x55e   : > { %v1524_v52 = vmul.f32 %v4421_v49, %v4415_v40  ;;  %v4320_v49 = vld [vmem:[%s4761_s23 + $0x10] sm:$0xff]  }
 0x55f   : > { %v4423_v53 = vpop.eup %4422 }
 0x560   : > { %v1525_v54 = vmul.f32 %v4423_v53, %v4417_v42  ;;  %v1526_v55 = vpack.c.bf16 %v1524_v52, %v1523_v51  ;;  %v1593_v4 = vpop.permute.xlu1 %1592 }
 0x562   : > { %4115 = vmatprep.mubr.msk.bf16.mxu1 %vm1492_vm7, %v1526_v55  ;;  %v1527_v56 = vpack.c.bf16 %v1525_v54, %v1525_v54 }
 0x564   : > { %4116 = vmatmul.mubr.msk.bf16.vlgmr.msra.gmra.mrb[4].mxu1 %vm1492_vm7, %v1527_v56 }
 0x565   : > { %4120 = vmatpush3.bf16.xpose.msra.mxu1 %v1607_v57  ;;  %4123 = vmatprep.mubr.msk.bf16.mxu1 %vm1431_vm4, %v1591_v61  ;;  %v4321_v61 = vld [vmem:[%s4761_s23 + $0x18] sm:$0xff]  }
 0x566   : > { %4223 = vmatprep.subr.msk.bf16.mxu1 %vm1431_vm4, %v1599_v50 }
 0x56d   : > { %4122 = vmatpush3.bf16.xpose.msra.mxu1 %v1610_v63 }
 0x56e   : > { %4143 = vmatprep.subr.bf16.mxu1 %v4318_v62 }
 0x574   : > { %4124 = vmatmul.mubr.msk.bf16.vlgmr.msra.gmra.mrb[8].mxu1 %vm1431_vm4, %v1593_v4 }
 0x575   : > { %4144 = vmatpush3.bf16.msra.mxu1 %v4318_v62 }
 0x576   : > { %4145 = vmatprep.subr.bf16.mxu1 %v4319_v5 }
 0x579   : > { %4146 = vmatpush3.bf16.msra.mxu1 %v4319_v5 }
 0x637   : > { %v4117_v6 = vpop.f32.mrb[4].mxu1 }
 0x638   : > { %v1572_v8 = vpop.f32.mrb[5].mxu1  ;;  %v1587_v13 = vpack.c.bf16 %v4117_v6, %v4117_v6 }
 0x639   : > { %v4118_v9 = vpop.f32.mrb[6].mxu1 }
 0x63a   : > { %v1575_v10 = vpop.f32.mrb[7].mxu1 }
 0x63b   : > { %v1586_v11 = vpack.c.bf16 %v1575_v10, %v1572_v8 }
 0x63d   : > { %4147 = vmatprep.mubr.msk.bf16.mxu1 %vm1431_vm4, %v1586_v11 }
 0x63e   : > { %4148 = vmatmul.mubr.msk.bf16.vlgmr.msra.gmra.mrb[12].mxu1 %vm1431_vm4, %v1587_v13 }
 0x647   : > { %v4125_v14 = vpop.f32.mrb[8].mxu1 }
 0x648   : > { %v1646_v16 = vpop.f32.mrb[9].mxu1  ;;  %v1655_v20 = vadd.f32 %v4125_v14, %v4935_v15 }
 0x649   : > { %v1647_v17 = vadd.f32 %v1646_v16, %v4935_v15  ;;  %v4126_v18 = vpop.f32.mrb[10].mxu1 }
 0x64a   : > { %v1649_v19 = vpop.f32.mrb[11].mxu1  ;;  %v1666_v0 = vsel %vm1492_vm7, %v1655_v20, -inf }
 0x64b   : > { %v1650_v21 = vadd.f32 %v1649_v19, %v4935_v15  ;;  %v1660_v22 = vsel %vm1492_vm7, %v1647_v17, -inf }
 0x64c   : > { %1661 = vmax.xlane.f32.xlu0 %v1660_v22 }
 0x64d   : > { %v1663_v23 = vsel %vm1492_vm7, %v1650_v21, -inf }
 0x64e   : > { %1664 = vmax.xlane.f32.xlu1 %v1663_v23 }
 0x650   : > { %1667 = vmax.xlane.f32.xlu0 %v1666_v0 }
 0x6d9   : > { %v1662_v24 = vpop.xlane.xlu0 %1661 }
 0x6da   : > { %v1669_v25 = vsub.f32 %v1647_v17, %v1662_v24 }
 0x6db   : > { %v1665_v26 = vpop.xlane.xlu1 %1664 }
 0x6dc   : > { %v1672_v27 = vmul.f32 1.442695, %v1669_v25  ;;  %v1670_v28 = vsub.f32 %v1650_v21, %v1665_v26 }
 0x6dd   : > { %v1668_v29 = vpop.xlane.xlu0 %1667 }
 0x6de   : > { %4424 = vpow2.f32 %v1672_v27  ;;  %v1674_v30 = vmul.f32 1.442695, %v1670_v28  ;;  %v1671_v32 = vsub.f32 %v1655_v20, %v1668_v29 }
 0x6e0   : > { %4426 = vpow2.f32 %v1674_v30  ;;  %v1676_v33 = vmul.f32 1.442695, %v1671_v32 }
 0x6e2   : > { %4428 = vpow2.f32 %v1676_v33 }
 0x6e8   : > { %v4425_v35 = vpop.eup %4424 }
 0x6e9   : > { %v1678_v37 = vsel %vm1492_vm7, %v4425_v35, 0.0 }
 0x6ea   : > { %v4427_v39 = vpop.eup %4426  ;;  %1679 = vadd.xlane.f32.xlu0 %v1678_v37 }
 0x6eb   : > { %v1681_v41 = vsel %vm1492_vm7, %v4427_v39, 0.0 }
 0x6ec   : > { %v4429_v40 = vpop.eup %4428 }
 0x6ed   : > { %v1684_v42 = vsel %vm1492_vm7, %v4429_v40, 0.0 }
 0x6ee   : > { %1682 = vadd.xlane.f32.xlu0 %v1681_v41  ;;  %1685 = vadd.xlane.f32.xlu1 %v1684_v42 }
 0x6ff   : > { %1699 = vrot.lane.b32.xlu1 %v4916_v2, %s4568_s18 }
 0x703   : > { %1897 = vrot.lane.b32.xlu1 %v4904_v58, %s4569_s25 }
 0x704   : > { %1697 = vrot.lane.b32.xlu0 %v4908_v60, %s4568_s18 }
 0x707   : > { %1899 = vrot.lane.b32.xlu1 %v4920_v7, %s4569_s25 }
 0x708   : > { %1893 = vrot.lane.b32.xlu0 %v4906_v59, %s4569_s25 }
 0x70b   : > { %1895 = vrot.lane.b32.xlu1 %v4930_v12, %s4569_s25 }
 0x70c   : > { %2133 = vrot.lane.b32.xlu0 %v4904_v58, %s4570_s5 }
 0x70f   : > { %2135 = vrot.lane.b32.xlu1 %v4920_v7, %s4570_s5 }
 0x710   : > { %2129 = vrot.lane.b32.xlu0 %v4906_v59, %s4570_s5 }
 0x711   : > { %v4993_v43 = vpop.f32.mrb[12].mxu1 }
 0x712   : > { %v4995_v44 = vpop.f32.mrb[13].mxu1 }
 0x713   : > { %2131 = vrot.lane.b32.xlu1 %v4930_v12, %s4570_s5  ;;  %v4150_v45 = vpop.f32.mrb[14].mxu1 }
 0x714   : > { %v4999_v46 = vpop.f32.mrb[15].mxu1 }
 0x777   : > { %v1680_v47 = vpop.xlane.xlu0 %1679 }
 0x778   : > { %4430 = vrcp.f32 %v1680_v47 }
 0x77b   : > { %v1686_v58 = vpop.xlane.xlu1 %1685  ;;  %v1683_v48 = vpop.xlane.xlu0 %1682 }
 0x77c   : > { %4432 = vrcp.f32 %v1686_v58 }
 0x77d   : > { %4434 = vrcp.f32 %v1683_v48 }
 0x77f   : > { %v1698_v7 = vpop.permute.xlu0 %1697  ;;  %v1700_v59 = vpop.permute.xlu1 %1699 }
 0x780   : > { %4127 = vmatprep.subr.bf16.mxu0 %v1698_v7  ;;  %v1709_v50 = vsel %vm1534_vm5, %v1700_v59, 0 }
 0x781   : > { %4128 = vmatpush3.bf16.msra.mxu0 %v1698_v7 }
 0x782   : > { %4224 = vmatprep.subr.msk.bf16.mxu0 %vm1534_vm5, %v1700_v59  ;;  %v4431_v12 = vpop.eup %4430 }
 0x783   : > { %v1690_v54 = vmul.f32 %v4431_v12, %v4425_v35  ;;  %v1898_v62 = vpop.permute.xlu1 %1897  ;;  %v1894_v11 = vpop.permute.xlu0 %1893 }
 0x784   : > { %v1908_v10 = vsel %vm1431_vm4, %v1898_v62, 0 }
 0x785   : > { %4130 = vmatpush3.bf16.msra.mxu0 %v1709_v50 }
 0x786   : > { %v4433_v51 = vpop.eup %4432  ;;  %4135 = vmatprep.subr.bf16.mxu0 %v4320_v49 }
 0x787   : > { %v4435_v52 = vpop.eup %4434  ;;  %v1692_v53 = vmul.f32 %v4433_v51, %v4429_v40  ;;  %v1900_v13 = vpop.permute.xlu1 %1899 }
 0x788   : > { %v1691_v55 = vmul.f32 %v4435_v52, %v4427_v39  ;;  %v1911_v14 = vsel %vm1431_vm4, %v1900_v13, 0  ;;  %v2134_v16 = vpop.permute.xlu0 %2133 }
 0x789   : > { %v1694_v56 = vpack.c.bf16 %v1692_v53, %v1692_v53  ;;  %v2144_v18 = vsel %vm1431_vm4, %v2134_v16, 0 }
 0x78a   : > { %v1693_v57 = vpack.c.bf16 %v1691_v55, %v1690_v54 }
 0x78b   : > { %v1896_v17 = vpop.permute.xlu1 %1895 }
 0x78c   : > { %4131 = vmatprep.mubr.msk.bf16.mxu0 %vm1492_vm7, %v1693_v57  ;;  %v2130_v19 = vpop.permute.xlu0 %2129 }
 0x78d   : > { %4132 = vmatmul.mubr.msk.bf16.vlgmr.msra.gmra.mrb[12].mxu0 %vm1492_vm7, %v1694_v56 }
 0x78e   : > { %4136 = vmatpush3.bf16.msra.mxu0 %v4320_v49 }
 0x78f   : > { %4137 = vmatprep.subr.bf16.mxu0 %v4321_v61  ;;  %v2136_v20 = vpop.permute.xlu1 %2135 }
 0x790   : > { %v2147_v21 = vsel %vm1431_vm4, %v2136_v20, 0 }
 0x792   : > { %4138 = vmatpush3.bf16.msra.mxu0 %v4321_v61 }
 0x793   : > { %4225 = vmatprep.subr.msk.bf16.mxu0 %vm1431_vm4, %v1898_v62  ;;  %v2132_v22 = vpop.permute.xlu1 %2131 }
 0x860   : > { %v4133_v63 = vpop.f32.mrb[12].mxu0 }
 0x861   : > { %v1745_v4 = vpop.f32.mrb[13].mxu0  ;;  %v1760_v9 = vpack.c.bf16 %v4133_v63, %v4133_v63 }
 0x862   : > { %v4134_v5 = vpop.f32.mrb[14].mxu0 }
 0x863   : > { %v1748_v6 = vpop.f32.mrb[15].mxu0 }
 0x864   : > { %v1759_v8 = vpack.c.bf16 %v1748_v6, %v1745_v4 }
 0x866   : > { %4139 = vmatprep.mubr.msk.bf16.mxu0 %vm1431_vm4, %v1759_v8 }
 0x867   : > { %4140 = vmatmul.mubr.msk.bf16.vlgmr.msra.gmra.mrb[16].mxu0 %vm1431_vm4, %v1760_v9 }
 0x868   : > { %4152 = vmatpush3.bf16.xpose.msra.mxu0 %v1908_v10  ;;  %4155 = vmatprep.mubr.msk.bf16.mxu0 %vm1431_vm4, %v1894_v11 }
 0x869   : > { %4226 = vmatprep.subr.msk.bf16.mxu0 %vm1431_vm4, %v1900_v13 }
 0x870   : > { %4154 = vmatpush3.bf16.xpose.msra.mxu0 %v1911_v14 }
 0x871   : > { %4228 = vmatprep.subr.msk.bf16.mxu0 %vm1431_vm4, %v2134_v16 }
 0x877   : > { %4156 = vmatmul.mubr.msk.bf16.vlgmr.msra.gmra.mrb[20].mxu0 %vm1431_vm4, %v1896_v17 }
 0x878   : > { %4176 = vmatpush3.bf16.xpose.msra.mxu0 %v2144_v18  ;;  %4179 = vmatprep.mubr.msk.bf16.mxu0 %vm1431_vm4, %v2130_v19 }
 0x879   : > { %4229 = vmatprep.subr.msk.bf16.mxu0 %vm1431_vm4, %v2136_v20 }
 0x880   : > { %4178 = vmatpush3.bf16.xpose.msra.mxu0 %v2147_v21 }
 0x887   : > { %4180 = vmatmul.mubr.msk.bf16.vlgmr.msra.gmra.mrb[24].mxu0 %vm1431_vm4, %v2132_v22 }
 0x888   : > { %2679 = vmatprep.mubr.bf16.mxu0 %v4566_v3 }
 0x93a   : > { %v4141_v23 = vpop.f32.mrb[16].mxu0 }
 0x93b   : > { %v5023_v0 = vadd.f32 %v4993_v43, %v4141_v23  ;;  %v1813_v24 = vpop.f32.mrb[17].mxu0 }
 0x93c   : > { %v5026_v25 = vadd.f32 %v4995_v44, %v1813_v24  ;;  %v4142_v26 = vpop.f32.mrb[18].mxu0 }
 0x93d   : > { %v1816_v27 = vpop.f32.mrb[19].mxu0 }
 0x93e   : > { %v5029_v28 = vadd.f32 %v4999_v46, %v1816_v27 }
 0x94a   : > { %v4157_v29 = vpop.f32.mrb[20].mxu0 }
 0x94b   : > { %v1947_v30 = vpop.f32.mrb[21].mxu0  ;;  %v1956_v37 = vadd.f32 %v4157_v29, %v4935_v15 }
 0x94c   : > { %v1948_v32 = vadd.f32 %v1947_v30, %v4935_v15  ;;  %v4158_v33 = vpop.f32.mrb[22].mxu0 }
 0x94d   : > { %v1950_v35 = vpop.f32.mrb[23].mxu0  ;;  %v1967_v42 = vsel %vm1492_vm7, %v1956_v37, -inf }
 0x94e   : > { %v1951_v39 = vadd.f32 %v1950_v35, %v4935_v15  ;;  %v1961_v40 = vsel %vm1492_vm7, %v1948_v32, -inf }
 0x94f   : > { %1962 = vmax.xlane.f32.xlu0 %v1961_v40 }
 0x950   : > { %v1964_v41 = vsel %vm1492_vm7, %v1951_v39, -inf }
 0x951   : > { %1965 = vmax.xlane.f32.xlu1 %v1964_v41 }
 0x953   : > { %1968 = vmax.xlane.f32.xlu0 %v1967_v42 }
 0x95a   : > { %v4181_v43 = vpop.f32.mrb[24].mxu0 }
 0x95b   : > { %v2183_v44 = vpop.f32.mrb[25].mxu0  ;;  %v2192_v63 = vadd.f32 %v4181_v43, %v4935_v15 }
 0x95c   : > { %v4182_v45 = vpop.f32.mrb[26].mxu0  ;;  %v2184_v61 = vadd.f32 %v2183_v44, %v4935_v15 }
 0x95d   : > { %v2186_v46 = vpop.f32.mrb[27].mxu0  ;;  %v2203_v6 = vsel %vm1492_vm7, %v2192_v63, -inf  ;;  %v4323_v45 = vld [vmem:[%s4761_s23 + $0x28] sm:$0xff]  }
 0x95e   : > { %v2187_v62 = vadd.f32 %v2186_v46, %v4935_v15  ;;  %v2197_v5 = vsel %vm1492_vm7, %v2184_v61, -inf  ;;  %v4322_v15 = vld [vmem:[%s4761_s23 + $0x20] sm:$0xff]  }
 0x960   : > { %v2200_v4 = vsel %vm1492_vm7, %v2187_v62, -inf }
 0x9dc   : > { %v1963_v47 = vpop.xlane.xlu0 %1962 }
 0x9dd   : > { %v1970_v58 = vsub.f32 %v1948_v32, %v1963_v47 }
 0x9de   : > { %v1966_v48 = vpop.xlane.xlu1 %1965 }
 0x9df   : > { %v1973_v7 = vmul.f32 1.442695, %v1970_v58  ;;  %v1971_v59 = vsub.f32 %v1951_v39, %v1966_v48 }
 0x9e0   : > { %v1969_v49 = vpop.xlane.xlu0 %1968 }
 0x9e1   : > { %4436 = vpow2.f32 %v1973_v7  ;;  %v1975_v50 = vmul.f32 1.442695, %v1971_v59  ;;  %v1972_v12 = vsub.f32 %v1956_v37, %v1969_v49 }
 0x9e3   : > { %4438 = vpow2.f32 %v1975_v50  ;;  %v1977_v51 = vmul.f32 1.442695, %v1972_v12 }
 0x9e5   : > { %4440 = vpow2.f32 %v1977_v51 }
 0x9eb   : > { %v4437_v52 = vpop.eup %4436 }
 0x9ec   : > { %v1979_v53 = vsel %vm1492_vm7, %v4437_v52, 0.0 }
 0x9ed   : > { %v4439_v54 = vpop.eup %4438  ;;  %1980 = vadd.xlane.f32.xlu0 %v1979_v53 }
 0x9ee   : > { %v1982_v56 = vsel %vm1492_vm7, %v4439_v54, 0.0 }
 0x9ef   : > { %v4441_v55 = vpop.eup %4440 }
 0x9f0   : > { %v1985_v57 = vsel %vm1492_vm7, %v4441_v55, 0.0 }
 0x9f1   : > { %1983 = vadd.xlane.f32.xlu0 %v1982_v56  ;;  %1986 = vadd.xlane.f32.xlu1 %v1985_v57 }
 0xa02   : > { %1998 = vrot.lane.b32.xlu1 %v4916_v2, %s4569_s25 }
 0xa07   : > { %1996 = vrot.lane.b32.xlu0 %v4908_v60, %s4569_s25 }
 0xa26   : > { %2201 = vmax.xlane.f32.xlu0 %v2200_v4  ;;  %2198 = vmax.xlane.f32.xlu1 %v2197_v5  ;;  %v4325_v4 = vld [vmem:[%s4761_s23 + $0x38] sm:$0xff]  }
 0xa2a   : > { %2204 = vmax.xlane.f32.xlu0 %v2203_v6 }
 0xa7a   : > { %v1981_v8 = vpop.xlane.xlu0 %1980 }
 0xa7b   : > { %4442 = vrcp.f32 %v1981_v8 }
 0xa7e   : > { %v1987_v9 = vpop.xlane.xlu1 %1986  ;;  %v1984_v10 = vpop.xlane.xlu0 %1983 }
 0xa7f   : > { %4444 = vrcp.f32 %v1987_v9 }
 0xa80   : > { %4446 = vrcp.f32 %v1984_v10 }
 0xa82   : > { %v1997_v11 = vpop.permute.xlu0 %1996  ;;  %v1999_v13 = vpop.permute.xlu1 %1998 }
 0xa83   : > { %4159 = vmatprep.subr.bf16.mxu1 %v1997_v11  ;;  %v2008_v14 = vsel %vm1534_vm5, %v1999_v13, 0 }
 0xa84   : > { %4160 = vmatpush3.bf16.msra.mxu1 %v1997_v11 }
 0xa85   : > { %4227 = vmatprep.subr.msk.bf16.mxu1 %vm1534_vm5, %v1999_v13  ;;  %v4443_v16 = vpop.eup %4442 }
 0xa86   : > { %v1991_v20 = vmul.f32 %v4443_v16, %v4437_v52 }
 0xa88   : > { %4162 = vmatpush3.bf16.msra.mxu1 %v2008_v14 }
 0xa89   : > { %v4445_v17 = vpop.eup %4444  ;;  %4167 = vmatprep.subr.bf16.mxu1 %v4322_v15 }
 0xa8a   : > { %v4447_v18 = vpop.eup %4446  ;;  %v1993_v19 = vmul.f32 %v4445_v17, %v4441_v55 }
 0xa8b   : > { %v1992_v21 = vmul.f32 %v4447_v18, %v4439_v54 }
 0xa8c   : > { %v1995_v22 = vpack.c.bf16 %v1993_v19, %v1993_v19 }
 0xa8d   : > { %v1994_v23 = vpack.c.bf16 %v1992_v21, %v1991_v20 }
 0xa8f   : > { %4163 = vmatprep.mubr.msk.bf16.mxu1 %vm1492_vm7, %v1994_v23  ;;  %v3863_v23 = vld [vmem:[%s5558_s29] ss:$0 sm:$0xff] }
 0xa90   : > { %4164 = vmatmul.mubr.msk.bf16.vlgmr.msra.gmra.mrb[16].mxu1 %vm1492_vm7, %v1995_v22 }
 0xa91   : > { %4168 = vmatpush3.bf16.msra.mxu1 %v4322_v15 }
 0xa92   : > { %4169 = vmatprep.subr.bf16.mxu1 %v4323_v45 }
 0xa95   : > { %4170 = vmatpush3.bf16.msra.mxu1 %v4323_v45  ;;  %v4335_v45 = vld [vmem:[%s4785_s21 + $0x28] ss:$16 sps:$4 sm:$0xff]  }
 0xab3   : > { %v2199_v24 = vpop.xlane.xlu1 %2198  ;;  %v2202_v26 = vpop.xlane.xlu0 %2201 }
 0xab4   : > { %v2207_v27 = vsub.f32 %v2187_v62, %v2202_v26  ;;  %v2206_v29 = vsub.f32 %v2184_v61, %v2199_v24  ;;  %v4514_v24 = vld [vmem:[#allocation2] sm:$0xff] }
 0xab6   : > { %v2211_v30 = vmul.f32 1.442695, %v2207_v27  ;;  %v2209_v35 = vmul.f32 1.442695, %v2206_v29  ;;  %v4515_v29 = vld [vmem:[#allocation2 + $0x8] sm:$0xff] }
 0xab7   : > { %v2205_v32 = vpop.xlane.xlu0 %2204 }
 0xab8   : > { %v2208_v33 = vsub.f32 %v2192_v63, %v2205_v32  ;;  %4448 = vpow2.f32 %v2211_v30  ;;  %v4324_v63 = vld [vmem:[%s4761_s23 + $0x30] sm:$0xff]  }
 0xaba   : > { %v2213_v37 = vmul.f32 1.442695, %v2208_v33 }
 0xabc   : > { %4450 = vpow2.f32 %v2213_v37 }
 0xabd   : > { %4452 = vpow2.f32 %v2209_v35 }
 0xac2   : > { %v4449_v39 = vpop.eup %4448 }
 0xac3   : > { %v2218_v40 = vsel %vm1492_vm7, %v4449_v39, 0.0 }
 0xac4   : > { %2219 = vadd.xlane.f32.xlu0 %v2218_v40  ;;  %v4328_v40 = vld [vmem:[%s4785_s21 + $0x4] ss:$16 sps:$4 sm:$0xff]  }
 0xac5   : > { %2647 = vmatprep.subr.bf16.mxu0 %v4328_v40 }
 0xac6   : > { %v4451_v41 = vpop.eup %4450 }
 0xac7   : > { %v2221_v42 = vsel %vm1492_vm7, %v4451_v41, 0.0  ;;  %v4453_v43 = vpop.eup %4452 }
 0xac8   : > { %2222 = vadd.xlane.f32.xlu1 %v2221_v42  ;;  %v2215_v44 = vsel %vm1492_vm7, %v4453_v43, 0.0  ;;  %v4331_v42 = vld [vmem:[%s4785_s21 + $0xc] ss:$16 sps:$4 sm:$0xff]  }
 0xacc   : > { %2216 = vadd.xlane.f32.xlu1 %v2215_v44  ;;  %v4337_v44 = vld [vmem:[%s4785_s21 + $0x2c] ss:$16 sps:$4 sm:$0xff]  }
 0xada   : > { %2232 = vrot.lane.b32.xlu0 %v4908_v60, %s4570_s5 }
 0xadd   : > { %2234 = vrot.lane.b32.xlu1 %v4916_v2, %s4570_s5 }
 0xb51   : > { %v2220_v46 = vpop.xlane.xlu0 %2219 }
 0xb52   : > { %4454 = vrcp.f32 %v2220_v46 }
 0xb55   : > { %v2223_v47 = vpop.xlane.xlu1 %2222  ;;  %v2233_v58 = vpop.permute.xlu0 %2232 }
 0xb56   : > { %4183 = vmatprep.subr.bf16.mxu1 %v2233_v58 }
 0xb59   : > { %v2217_v48 = vpop.xlane.xlu1 %2216 }
 0xb5a   : > { %4456 = vrcp.f32 %v2217_v48 }
 0xb5b   : > { %4458 = vrcp.f32 %v2223_v47 }
 0xb5c   : > { %v4455_v7 = vpop.eup %4454 }
 0xb5d   : > { %v2228_v52 = vmul.f32 %v4455_v7, %v4449_v39  ;;  %v2235_v56 = vpop.permute.xlu1 %2234  ;;  %v4326_v39 = vld [vmem:[%s4785_s21] ss:$16 sps:$4 sm:$0xff]  }
 0xb5e   : > { %v2244_v61 = vsel %vm1534_vm5, %v2235_v56, 0  ;;  %2648 = vmatpush1.bf16.msra.mxu0 %v4326_v39 }
 0xb63   : > { %v4165_v59 = vpop.f32.mrb[16].mxu1 }
 0xb64   : > { %v4457_v49 = vpop.eup %4456  ;;  %v2044_v50 = vpop.f32.mrb[17].mxu1  ;;  %v2059_v2 = vpack.c.bf16 %v4165_v59, %v4165_v59 }
 0xb65   : > { %v4166_v12 = vpop.f32.mrb[18].mxu1  ;;  %v2227_v51 = vmul.f32 %v4457_v49, %v4453_v43  ;;  %v4459_v55 = vpop.eup %4458  ;;  %v4334_v43 = vld [vmem:[%s4785_s21 + $0x24] ss:$16 sps:$4 sm:$0xff]  }
 0xb66   : > { %v2047_v53 = vpop.f32.mrb[19].mxu1  ;;  %v2229_v57 = vmul.f32 %v4459_v55, %v4451_v41  ;;  %v4329_v41 = vld [vmem:[%s4785_s21 + $0x8] ss:$16 sps:$4 sm:$0xff]   ;;  %2649 = vmatprep.subr.bf16.mxu0 %v4334_v43 }
 0xb67   : > { %v2058_v60 = vpack.c.bf16 %v2047_v53, %v2044_v50  ;;  %v2230_v54 = vpack.c.bf16 %v2228_v52, %v2227_v51  ;;  %v4341_v55 = vld [vmem:[%s4785_s21 + $0x48] ss:$16 sps:$4 sm:$0xff]  }
 0xb68   : > { %v2231_v62 = vpack.c.bf16 %v2229_v57, %v2229_v57  ;;  %v4349_v57 = vld [vmem:[%s4785_s21 + $0x6c] ss:$16 sps:$4 sm:$0xff]  }
 0xb69   : > { %4171 = vmatprep.mubr.msk.bf16.mxu1 %vm1431_vm4, %v2058_v60  ;;  %v4340_v60 = vld [vmem:[%s4785_s21 + $0x44] ss:$16 sps:$4 sm:$0xff]  }
 0xb6a   : > { %4172 = vmatmul.mubr.msk.bf16.vlgmr.msra.gmra.mrb[20].mxu1 %vm1431_vm4, %v2059_v2  ;;  %v4338_v2 = vld [vmem:[%s4785_s21 + $0x40] ss:$16 sps:$4 sm:$0xff]  }
 0xb6b   : > { %4184 = vmatpush3.bf16.msra.mxu1 %v2233_v58  ;;  %4187 = vmatprep.mubr.msk.bf16.mxu1 %vm1492_vm7, %v2230_v54  ;;  %v4343_v54 = vld [vmem:[%s4785_s21 + $0x4c] ss:$16 sps:$4 sm:$0xff]  }
 0xb6c   : > { %4230 = vmatprep.subr.msk.bf16.mxu1 %vm1534_vm5, %v2235_v56  ;;  %v4346_v56 = vld [vmem:[%s4785_s21 + $0x64] ss:$16 sps:$4 sm:$0xff]   ;;  %vm4573_vm5 = vmmov (!%p3931_p8), 0  }
 0xb6f   : > { %4186 = vmatpush3.bf16.msra.mxu1 %v2244_v61  ;;  %v4344_v61 = vld [vmem:[%s4785_s21 + $0x60] ss:$16 sps:$4 sm:$0xff]  }
 0xb70   : > { %4191 = vmatprep.subr.bf16.mxu1 %v4324_v63 }
 0xb72   : > { %4188 = vmatmul.mubr.msk.bf16.vlgmr.msra.gmra.mrb[24].mxu1 %vm1492_vm7, %v2231_v62  ;;  %v4347_v62 = vld [vmem:[%s4785_s21 + $0x68] ss:$16 sps:$4 sm:$0xff]  }
 0xb73   : > { %4192 = vmatpush3.bf16.msra.mxu1 %v4324_v63  ;;  %v4352_v63 = vld [vmem:[%s4785_s21 + $0x84] ss:$16 sps:$4 sm:$0xff]  }
 0xb74   : > { %4193 = vmatprep.subr.bf16.mxu1 %v4325_v4 }
 0xb77   : > { %4194 = vmatpush3.bf16.msra.mxu1 %v4325_v4  ;;  %v4355_v4 = vld [vmem:[%s4785_s21 + $0x8c] ss:$16 sps:$4 sm:$0xff]  }
 0xb78   : > { %2698 = vmatprep.subr.bf16.mxu1 %v4331_v42  ;;  %v3865_v42 = vld [vmem:[%s5561_s6] ss:$0 sm:$0xff] }
 0xc3d   : > { %v4173_v5 = vpop.f32.mrb[20].mxu1 }
 0xc3e   : > { %v2128_v6 = vadd.f32 %v4173_v5, %v5023_v0  ;;  %v2112_v8 = vpop.f32.mrb[21].mxu1  ;;  %v4350_v5 = vld [vmem:[%s4785_s21 + $0x80] ss:$16 sps:$4 sm:$0xff]  }
 0xc3f   : > { %v2126_v9 = vadd.f32 %v2112_v8, %v5026_v25  ;;  %v4174_v10 = vpop.f32.mrb[22].mxu1  ;;  %v4358_v8 = vld [vmem:[%s4785_s21 + $0xa4] ss:$16 sps:$4 sm:$0xff]  }
 0xc40   : > { %v2115_v11 = vpop.f32.mrb[23].mxu1  ;;  %v4356_v10 = vld [vmem:[%s4785_s21 + $0xa0] ss:$16 sps:$4 sm:$0xff]  }
 0xc41   : > { %v2127_v13 = vadd.f32 %v2115_v11, %v5029_v28  ;;  %v4359_v11 = vld [vmem:[%s4785_s21 + $0xa8] ss:$16 sps:$4 sm:$0xff]  }
 0xc45   : > { %v4189_v15 = vpop.f32.mrb[24].mxu1 }
 0xc46   : > { %v2280_v14 = vpop.f32.mrb[25].mxu1  ;;  %v2295_v19 = vpack.c.bf16 %v4189_v15, %v4189_v15  ;;  %v4367_v15 = vld [vmem:[%s4785_s21 + $0xcc] ss:$16 sps:$4 sm:$0xff]  }
 0xc47   : > { %v4190_v16 = vpop.f32.mrb[26].mxu1 }
 0xc48   : > { %v2283_v17 = vpop.f32.mrb[27].mxu1  ;;  %v4365_v16 = vld [vmem:[%s4785_s21 + $0xc8] ss:$16 sps:$4 sm:$0xff]  }
 0xc49   : > { %v2294_v18 = vpack.c.bf16 %v2283_v17, %v2280_v14  ;;  %v4362_v14 = vld [vmem:[%s4785_s21 + $0xc0] ss:$16 sps:$4 sm:$0xff]   ;;  %v4370_v17 = vld [vmem:[%s4785_s21 + $0xe4] ss:$16 sps:$4 sm:$0xff]  }
 0xc4b   : > { %4195 = vmatprep.mubr.msk.bf16.mxu1 %vm1431_vm4, %v2294_v18  ;;  %v4373_v18 = vld [vmem:[%s4785_s21 + $0xec] ss:$16 sps:$4 sm:$0xff]  }
 0xc4c   : > { %4196 = vmatmul.mubr.msk.bf16.vlgmr.msra.gmra.mrb[28].mxu1 %vm1431_vm4, %v2295_v19  ;;  %v4368_v19 = vld [vmem:[%s4785_s21 + $0xe0] ss:$16 sps:$4 sm:$0xff]   ;;  %vm3452_vm4 = vcmask (!%p3931_p8), 1040384  }
 0xc4d   : > { %2730 = vmatprep.mubr.bf16.mxu1 %v4566_v3  ;;  %2699 = vmatpush1.bf16.msra.mxu1 %v4329_v41 }
 0xc4e   : > { %2700 = vmatprep.subr.bf16.mxu1 %v4337_v44 }
 0xc51   : > { %2701 = vmatpush1.bf16.msra.mxu1 %v4335_v45 }
 0xc52   : > { %2702 = vmatprep.subr.bf16.mxu1 %v4343_v54  ;;  %v4383_v54 = vld [vmem:[%s4795_s28 + $0xd0] sm:$0xff]  }
 0xc55   : > { %2703 = vmatpush1.bf16.msra.mxu1 %v4341_v55  ;;  %v4385_v55 = vld [vmem:[%s4795_s28 + $0x90] sm:$0xff]  }
 0xc56   : > { %2704 = vmatprep.subr.bf16.mxu1 %v4349_v57  ;;  %v4387_v57 = vld [vmem:[%s4795_s28 + $0xd8] sm:$0xff]  }
 0xc59   : > { %2705 = vmatpush1.bf16.msra.mxu1 %v4347_v62  ;;  %v4389_v62 = vld [vmem:[%s4795_s28 + $0x98] sm:$0xff]  }
 0xc5a   : > { %2706 = vmatprep.subr.bf16.mxu1 %v4355_v4  ;;  %v4391_v4 = vld [vmem:[%s4795_s28 + $0xe0] sm:$0xff]  }
 0xd1f   : > { %v4197_v0 = vpop.f32.mrb[28].mxu1 }
 0xd20   : > { %v2364_v20 = vadd.f32 %v4197_v0, %v2128_v6  ;;  %v2348_v25 = vpop.f32.mrb[29].mxu1  ;;  %v4353_v6 = vld [vmem:[%s4785_s21 + $0x88] ss:$16 sps:$4 sm:$0xff]  }
 0xd21   : > { %v2362_v21 = vadd.f32 %v2348_v25, %v2126_v9  ;;  %v4198_v22 = vpop.f32.mrb[30].mxu1  ;;  %2707 = vmatpush1.bf16.msra.mxu1 %v4353_v6  ;;  %v4361_v9 = vld [vmem:[%s4785_s21 + $0xac] ss:$16 sps:$4 sm:$0xff]   ;;  %v4371_v0 = vld [vmem:[%s4785_s21 + $0xe8] ss:$16 sps:$4 sm:$0xff]   ;;  %v4393_v6 = vld [vmem:[%s4795_s28 + $0xa0] sm:$0xff]  }
 0xd22   : > { %v2351_v28 = vpop.f32.mrb[31].mxu1  ;;  %v2367_v33 = vadd.f32 %v2364_v20, %v4838_v31  ;;  %v4332_v31 = vld [vmem:[%s4785_s21 + $0x20] ss:$16 sps:$4 sm:$0xff]   ;;  %2708 = vmatprep.subr.bf16.mxu1 %v4361_v9  ;;  %v4395_v9 = vld [vmem:[%s4795_s28 + $0xe8] sm:$0xff]  }
 0xd23   : > { %v2365_v26 = vadd.f32 %v4514_v24, %v2362_v21  ;;  %v2363_v27 = vadd.f32 %v2351_v28, %v2127_v13  ;;  %2650 = vmatpush1.bf16.msra.mxu0 %v4332_v31  ;;  %v4364_v13 = vld [vmem:[%s4785_s21 + $0xc4] ss:$16 sps:$4 sm:$0xff]  }
 0xd24   : > { %v5089_v37 = vadd.f32 %v3863_v23, %v2367_v33  ;;  %2651 = vmatprep.subr.bf16.mxu0 %v4340_v60  ;;  %v4382_v60 = vld [vmem:[%s4795_s28 + $0x50] sm:$0xff]  }
 0xd25   : > { %v2366_v30 = vadd.f32 %v4515_v29, %v2363_v27  ;;  %v5082_v32 = vadd.f32 %v3863_v23, %v2365_v26  ;;  %2709 = vmatpush1.bf16.msra.mxu1 %v4359_v11  ;;  %v4397_v11 = vld [vmem:[%s4795_s28 + $0xa8] sm:$0xff]  }
 0xd26   : > { %2710 = vmatprep.subr.bf16.mxu1 %v4367_v15  ;;  %v4399_v15 = vld [vmem:[%s4795_s28 + $0xf0] sm:$0xff]  }
 0xd27   : > { %2380 = vadd.xlane.f32.xlu1 %v5082_v32  ;;  %v5086_v35 = vadd.f32 %v3863_v23, %v2366_v30  ;;  %2652 = vmatpush1.bf16.msra.mxu0 %v4338_v2  ;;  %v3864_v30 = vld [vmem:[%s5559_s0] ss:$0 sm:$0xff]  ;;  %v4384_v2 = vld [vmem:[%s4795_s28 + $0x10] sm:$0xff]  }
 0xd28   : > { %2653 = vmatprep.subr.bf16.mxu0 %v4346_v56  ;;  %v4386_v56 = vld [vmem:[%s4795_s28 + $0x58] sm:$0xff]  }
 0xd29   : > { %2382 = vadd.xlane.f32.xlu0 %v5086_v35  ;;  %2711 = vmatpush1.bf16.msra.mxu1 %v4365_v16  ;;  %v4401_v16 = vld [vmem:[%s4795_s28 + $0xb0] sm:$0xff]  }
 0xd2a   : > { %2712 = vmatprep.subr.bf16.mxu1 %v4373_v18  ;;  %v4403_v18 = vld [vmem:[%s4795_s28 + $0xf8] sm:$0xff]  }
 0xd2b   : > { %2654 = vmatpush1.bf16.msra.mxu0 %v4344_v61  ;;  %v4388_v61 = vld [vmem:[%s4795_s28 + $0x18] sm:$0xff]  }
 0xd2c   : > { %2655 = vmatprep.subr.bf16.mxu0 %v4352_v63  ;;  %v4390_v63 = vld [vmem:[%s4795_s28 + $0x60] sm:$0xff]  }
 0xd2d   : > { %2384 = vadd.xlane.f32.xlu0 %v5089_v37  ;;  %2713 = vmatpush1.bf16.msra.mxu1 %v4371_v0  ;;  %v4405_v0 = vld [vmem:[%s4795_s28 + $0xb8] sm:$0xff]  }
 0xd2f   : > { %2656 = vmatpush1.bf16.msra.mxu0 %v4350_v5  ;;  %v4392_v5 = vld [vmem:[%s4795_s28 + $0x20] sm:$0xff]  }
 0xd30   : > { %2657 = vmatprep.subr.bf16.mxu0 %v4358_v8  ;;  %v4394_v8 = vld [vmem:[%s4795_s28 + $0x68] sm:$0xff]  }
 0xd33   : > { %2658 = vmatpush1.bf16.msra.mxu0 %v4356_v10  ;;  %v4396_v10 = vld [vmem:[%s4795_s28 + $0x28] sm:$0xff]  }
 0xd34   : > { %2659 = vmatprep.subr.bf16.mxu0 %v4364_v13  ;;  %v4398_v13 = vld [vmem:[%s4795_s28 + $0x70] sm:$0xff]  }
 0xd37   : > { %2660 = vmatpush1.bf16.msra.mxu0 %v4362_v14  ;;  %v4400_v14 = vld [vmem:[%s4795_s28 + $0x30] sm:$0xff]  }
 0xd38   : > { %2661 = vmatprep.subr.bf16.mxu0 %v4370_v17  ;;  %v4402_v17 = vld [vmem:[%s4795_s28 + $0x78] sm:$0xff]  }
 0xd3b   : > { %2662 = vmatpush1.bf16.msra.mxu0 %v4368_v19  ;;  %v4404_v19 = vld [vmem:[%s4795_s28 + $0x38] sm:$0xff]  }
 0xdb4   : > { %v2381_v46 = vpop.xlane.xlu1 %2380 }
 0xdb5   : > { %v2386_v47 = vmul.f32 0.0078125, %v2381_v46 }
 0xdb6   : > { %v2383_v58 = vpop.xlane.xlu0 %2382 }
 0xdb7   : > { %v5101_v48 = vsub.f32 %v5082_v32, %v2386_v47  ;;  %v2387_v7 = vmul.f32 0.0078125, %v2383_v58 }
 0xdb9   : > { %v5104_v59 = vsub.f32 %v5086_v35, %v2387_v7  ;;  %v2392_v49 = vmul.f32 %v5101_v48, %v5101_v48 }
 0xdba   : > { %v2385_v50 = vpop.xlane.xlu0 %2384 }
 0xdbb   : > { %v2388_v12 = vmul.f32 0.0078125, %v2385_v50  ;;  %2395 = vadd.xlane.f32.xlu1 %v2392_v49  ;;  %v2393_v51 = vmul.f32 %v5104_v59, %v5104_v59  ;;  %v4375_v49 = vld [vmem:[%s4795_s28 + $0xc0] sm:$0xff]  }
 0xdbc   : > { %v4376_v50 = vld [vmem:[%s4795_s28] sm:$0xff]   ;;  %4036 = vmatprep.subr.bf16.mxu1 %v4375_v49 }
 0xdbd   : > { %v5111_v52 = vsub.f32 %v5089_v37, %v2388_v12  ;;  %2397 = vadd.xlane.f32.xlu0 %v2393_v51  ;;  %v4377_v12 = vld [vmem:[%s4795_s28 + $0x80] sm:$0xff]   ;;  %v4378_v51 = vld [vmem:[%s4795_s28 + $0x48] sm:$0xff]  }
 0xdbf   : > { %v2394_v53 = vmul.f32 %v5111_v52, %v5111_v52 }
 0xdc1   : > { %2399 = vadd.xlane.f32.xlu1 %v2394_v53  ;;  %v4381_v53 = vld [vmem:[%s4795_s28 + $0x88] sm:$0xff]  }
 0xe48   : > { %v2396_v20 = vpop.xlane.xlu1 %2395 }
 0xe49   : > { %v2401_v25 = vmul.f32 0.0078125, %v2396_v20  ;;  %v2463_v20 = vld [vmem:[%s4790_s20] sm:$0xf]  ;;  %s5566_s20 = sld [smem:[#allocation23_spill]] (!%p3931_p8) }
 0xe4a   : > { %v2398_v21 = vpop.xlane.xlu0 %2397 }
 0xe4b   : > { %v2404_v22 = vadd.f32 1e-06, %v2401_v25  ;;  %v2402_v28 = vmul.f32 0.0078125, %v2398_v21  ;;  %v2481_v25 = vsub.s32 3, %v4723_v1  ;;  %v5189_v21 = vrot.slane %v2463_v20, %v4894_v34 }
 0xe4d   : > { %4460 = vrsqrt.f32 %v2404_v22  ;;  %v2405_v23 = vadd.f32 1e-06, %v2402_v28  ;;  %v5193_v22 = vrot.slane %v2463_v20, %v1170_v38  ;;  %v5197_v28 = vrot.slane %v2463_v20, %v1166_v36 }
 0xe4e   : > { %v2400_v24 = vpop.xlane.xlu1 %2399 }
 0xe4f   : > { %4462 = vrsqrt.f32 %v2405_v23  ;;  %v2403_v26 = vmul.f32 0.0078125, %v2400_v24  ;;  %v5199_v23 = vrot.slane %v2463_v20, %v2481_v25 }
 0xe51   : > { %v2406_v27 = vadd.f32 1e-06, %v2403_v26 }
 0xe53   : > { %4464 = vrsqrt.f32 %v2406_v27 }
 0xe57   : > { %v4461_v29 = vpop.eup %4460 }
 0xe58   : > { %v2410_v33 = vmul.f32 %v4461_v29, %v5101_v48 }
 0xe59   : > { %v4463_v39 = vpop.eup %4462 }
 0xe5a   : > { %v2411_v40 = vmul.f32 %v4463_v39, %v5104_v59  ;;  %v2419_v41 = vmul.f32 %v3864_v30, %v2410_v33  ;;  %v4374_v59 = vld [vmem:[%s4795_s28 + $0x40] sm:$0xff]  }
 0xe5b   : > { %4008 = vmatprep.subr.bf16.mxu0 %v4374_v59 }
 0xe5c   : > { %v2420_v43 = vmul.f32 %v3864_v30, %v2411_v40  ;;  %v2428_v31 = vadd.f32 %v3865_v42, %v2419_v41 }
 0xe5d   : > { %v4465_v44 = vpop.eup %4464 }
 0xe5e   : > { %v2429_v45 = vadd.f32 %v3865_v42, %v2420_v43  ;;  %v2412_v46 = vmul.f32 %v4465_v44, %v5111_v52  ;;  %v4380_v52 = vld [vmem:[%s4795_s28 + $0x8] sm:$0xff]  }
 0xe60   : > { %v2464_v47 = vpack.c.bf16 %v2429_v45, %v2428_v31  ;;  %v2421_v58 = vmul.f32 %v3864_v30, %v2412_v46 }
 0xe62   : > { %2680 = vmatmul.mubr.bf16.vlgmr.msra.gmra.mrb[28].mxu0 %v2464_v47  ;;  %2731 = vmatmul.mubr.bf16.vlgmr.msra.gmra.mrb[32].mxu1 %v2464_v47  ;;  %v2430_v48 = vadd.f32 %v3865_v42, %v2421_v58 }
 0xe63   : > { %2689 = vmatprep.mubr.bf16.mxu0 %v4566_v3  ;;  %2740 = vmatprep.mubr.bf16.mxu1 %v4566_v3  ;;  %v4379_v3 = vld [vmem:[%s4795_s28 + $0xc8] sm:$0xff]  }
 0xe64   : > { %v2465_v7 = vpack.c.bf16 %v2430_v48, %v2430_v48  ;;  %4009 = vmatpush3.bf16.msra.mxu0 %v4376_v50  ;;  %4037 = vmatpush3.bf16.msra.mxu1 %v4377_v12 }
 0xe65   : > { %4010 = vmatprep.subr.bf16.mxu0 %v4378_v51  ;;  %4038 = vmatprep.subr.bf16.mxu1 %v4379_v3 }
 0xe68   : > { %4011 = vmatpush3.bf16.msra.mxu0 %v4380_v52  ;;  %4039 = vmatpush3.bf16.msra.mxu1 %v4381_v53 }
 0xe69   : > { %4012 = vmatprep.subr.bf16.mxu0 %v4382_v60  ;;  %4040 = vmatprep.subr.bf16.mxu1 %v4383_v54 }
 0xe6a   : > { %2690 = vmatmul.mubr.bf16.gmra.mrb[32].mxu0 %v2465_v7  ;;  %2741 = vmatmul.mubr.bf16.gmra.mrb[36].mxu1 %v2465_v7 }
 0xe6c   : > { %4013 = vmatpush3.bf16.msra.mxu0 %v4384_v2  ;;  %4041 = vmatpush3.bf16.msra.mxu1 %v4385_v55 }
 0xe6d   : > { %4014 = vmatprep.subr.bf16.mxu0 %v4386_v56  ;;  %4042 = vmatprep.subr.bf16.mxu1 %v4387_v57 }
 0xe70   : > { %4015 = vmatpush3.bf16.msra.mxu0 %v4388_v61  ;;  %4043 = vmatpush3.bf16.msra.mxu1 %v4389_v62 }
 0xe71   : > { %4016 = vmatprep.subr.bf16.mxu0 %v4390_v63  ;;  %4044 = vmatprep.subr.bf16.mxu1 %v4391_v4 }
 0xe74   : > { %4017 = vmatpush3.bf16.msra.mxu0 %v4392_v5  ;;  %4045 = vmatpush3.bf16.msra.mxu1 %v4393_v6 }
 0xe75   : > { %4018 = vmatprep.subr.bf16.mxu0 %v4394_v8  ;;  %4046 = vmatprep.subr.bf16.mxu1 %v4395_v9 }
 0xe78   : > { %4019 = vmatpush3.bf16.msra.mxu0 %v4396_v10  ;;  %4047 = vmatpush3.bf16.msra.mxu1 %v4397_v11 }
 0xe79   : > { %4020 = vmatprep.subr.bf16.mxu0 %v4398_v13  ;;  %4048 = vmatprep.subr.bf16.mxu1 %v4399_v15 }
 0xe7c   : > { %4021 = vmatpush3.bf16.msra.mxu0 %v4400_v14  ;;  %4049 = vmatpush3.bf16.msra.mxu1 %v4401_v16 }
 0xe7d   : > { %4022 = vmatprep.subr.bf16.mxu0 %v4402_v17  ;;  %4050 = vmatprep.subr.bf16.mxu1 %v4403_v18  ;;  %v4571_v18 = vmov -1.0  }
 0xe80   : > { %4023 = vmatpush3.bf16.msra.mxu0 %v4404_v19  ;;  %4051 = vmatpush3.bf16.msra.mxu1 %v4405_v0 }
 0xf35   : > { %v2681_v24 = vpop.f32.mrb[28].mxu0  ;;  %v2732_v26 = vpop.f32.mrb[32].mxu1 }
 0xf36   : > { %v2682_v27 = vadd.f32 %v2681_v24, %v5189_v21  ;;  %v2733_v29 = vadd.f32 %v2732_v26, %v5193_v22  ;;  %v2683_v30 = vpop.f32.mrb[29].mxu0  ;;  %v2734_v33 = vpop.f32.mrb[33].mxu1 }
 0xf37   : > { %v2684_v39 = vadd.f32 %v2683_v30, %v5197_v28  ;;  %v5205_v40 = vadd.f32 %v2734_v33, %v5199_v23  ;;  %v2685_v38 = vpop.f32.mrb[30].mxu0  ;;  %v2736_v41 = vpop.f32.mrb[34].mxu1 }
 0xf38   : > { %v2761_v1 = vmul.f32 0.70710677, %v2682_v27  ;;  %v2763_v36 = vmul.f32 0.70710677, %v2733_v29  ;;  %v2687_v46 = vpop.f32.mrb[31].mxu0  ;;  %v2738_v59 = vpop.f32.mrb[35].mxu1  ;;  %v2686_v2 = vadd.f32 %v2685_v38, %v5189_v21  ;;  %v2737_v4 = vadd.f32 %v2736_v41, %v5193_v22 }
 0xf39   : > { %v2762_v42 = vmul.f32 0.70710677, %v2684_v39  ;;  %v2764_v45 = vmul.f32 0.70710677, %v5205_v40  ;;  %v5223_v6 = vmul.f32 0.5, %v2682_v27  ;;  %v5226_v9 = vadd.f32 %v2687_v46, %v5197_v28 }
 0xf3a   : > { %v2797_v43 = vand.u32 2147483647, %v2761_v1  ;;  %v2799_v44 = vand.u32 2147483647, %v2763_v36  ;;  %v5220_v63 = vmul.f32 0.70710677, %v2686_v2 }
 0xf3b   : > { %v2798_v31 = vand.u32 2147483647, %v2762_v42  ;;  %v5212_v3 = vand.u32 2147483647, %v2764_v45  ;;  %vm2773_vm8 = vcmp.ge.f32.partialorder %v2761_v1, 0.0  ;;  %v5229_v14 = vmul.f32 0.5, %v2733_v29 }
 0xf3c   : > { %v2809_v47 = vmul.f32 0.3275911, %v2797_v43  ;;  %v2811_v58 = vmul.f32 0.3275911, %v2799_v44  ;;  %v2965_v48 = vsub.f32 0.0, %v2797_v43  ;;  %v2967_v60 = vsub.f32 0.0, %v2799_v44 }
 0xf3d   : > { %v2810_v7 = vmul.f32 0.3275911, %v2798_v31  ;;  %v5208_v12 = vpop.f32.mrb[32].mxu0  ;;  %v5210_v51 = vpop.f32.mrb[36].mxu1  ;;  %v2812_v61 = vmul.f32 0.3275911, %v5212_v3  ;;  %v5243_v29 = vadd.f32 %v2738_v59, %v5199_v23 }
 0xf3e   : > { %v2821_v49 = vadd.f32 1.0, %v2809_v47  ;;  %v2823_v50 = vadd.f32 1.0, %v2811_v58  ;;  %v5214_v52 = vpop.f32.mrb[33].mxu0  ;;  %v5216_v53 = vpop.f32.mrb[37].mxu1  ;;  %v2977_v57 = vmul.f32 %v2965_v48, %v2797_v43  ;;  %v2979_v10 = vmul.f32 %v2967_v60, %v2799_v44 }
 0xf3f   : > { %v2822_v54 = vadd.f32 1.0, %v2810_v7  ;;  %v2695_v55 = vpop.f32.mrb[34].mxu0  ;;  %v2746_v56 = vpop.f32.mrb[38].mxu1  ;;  %v2824_v8 = vadd.f32 1.0, %v2812_v61  ;;  %v2966_v11 = vsub.f32 0.0, %v2798_v31  ;;  %v5231_v16 = vmul.f32 0.5, %v2684_v39 }
 0xf40   : > { %4466 = vrcp.f32 %v2821_v49  ;;  %v2696_v62 = vpop.f32.mrb[35].mxu0  ;;  %v2747_v5 = vpop.f32.mrb[39].mxu1  ;;  %v2801_v13 = vand.u32 2147483647, %v5220_v63  ;;  %v2989_v15 = vmul.f32 1.442695, %v2977_v57 }
 0xf41   : > { %4468 = vrcp.f32 %v2823_v50  ;;  %v5233_v17 = vmul.f32 0.70710677, %v2737_v4  ;;  %v5236_v19 = vsel %vm2773_vm8, 1.0, %v4571_v18  ;;  %vm2775_vm9 = vcmp.ge.f32.partialorder %v2763_v36, 0.0 }
 0xf42   : > { %4470 = vrcp.f32 %v2822_v54  ;;  %v2813_v0 = vmul.f32 0.3275911, %v2801_v13  ;;  %vm2774_vm10 = vcmp.ge.f32.partialorder %v2762_v42, 0.0  ;;  %vm2776_vm11 = vcmp.ge.f32.partialorder %v2764_v45, 0.0 }
 0xf43   : > { %4472 = vrcp.f32 %v2824_v8  ;;  %v2803_v20 = vand.u32 2147483647, %v5233_v17  ;;  %v5240_v25 = vmul.f32 0.70710677, %v5226_v9  ;;  %v2993_v24 = vmul.f32 1.442695, %v2979_v10 }
 0xf44   : > { %v2978_v26 = vmul.f32 %v2966_v11, %v2798_v31  ;;  %v2825_v27 = vadd.f32 1.0, %v2813_v0  ;;  %4474 = vpow2.f32 %v2989_v15  ;;  %v5246_v30 = vsel %vm2775_vm9, 1.0, %v4571_v18 }
 0xf45   : > { %v2815_v33 = vmul.f32 0.3275911, %v2803_v20  ;;  %v5249_v39 = vand.u32 2147483647, %v5240_v25  ;;  %v5254_v41 = vsel %vm2774_vm10, 1.0, %v4571_v18  ;;  %v5257_v1 = vsel %vm2776_vm11, 1.0, %v4571_v18 }
 0xf46   : > { %v2968_v36 = vsub.f32 0.0, %v5212_v3  ;;  %4476 = vrcp.f32 %v2825_v27  ;;  %v2969_v44 = vsub.f32 0.0, %v2801_v13  ;;  %v2991_v47 = vmul.f32 1.442695, %v2978_v26 }
 0xf47   : > { %v2827_v31 = vadd.f32 1.0, %v2815_v33  ;;  %v2814_v45 = vmul.f32 0.3275911, %v5249_v39  ;;  %4478 = vpow2.f32 %v2993_v24  ;;  %v5266_v58 = vmul.f32 0.70710677, %v5243_v29 }
 0xf48   : > { %v5268_v7 = vmul.f32 0.5, %v2686_v2  ;;  %v2980_v60 = vmul.f32 %v2968_v36, %v5212_v3  ;;  %vm2777_vm12 = vcmp.ge.f32.partialorder %v5220_v63, 0.0  ;;  %v2981_v57 = vmul.f32 %v2969_v44, %v2801_v13 }
 0xf49   : > { %4480 = vrcp.f32 %v2827_v31  ;;  %v2826_v59 = vadd.f32 1.0, %v2814_v45  ;;  %v5275_v54 = vand.u32 2147483647, %v5266_v58  ;;  %v5279_v61 = vmul.f32 0.5, %v2737_v4 }
 0xf4a   : > { %v5251_v38 = vpop.eup %4466  ;;  %v2971_v5 = vsub.f32 0.0, %v2803_v20  ;;  %v2995_v0 = vmul.f32 1.442695, %v2980_v60  ;;  %v5288_v4 = vadd.f32 %v5208_v12, %v5189_v21  ;;  %v5295_v36 = vsel %vm2777_vm12, 1.0, %v4571_v18 }
 0xf4b   : > { %v5260_v42 = vpop.eup %4468  ;;  %v2857_v43 = vmul.f32 1.0614054, %v5251_v38  ;;  %4482 = vrcp.f32 %v2826_v59  ;;  %v2816_v3 = vmul.f32 0.3275911, %v5275_v54  ;;  %v2997_v31 = vmul.f32 1.442695, %v2981_v57 }
 0xf4c   : > { %v2859_v46 = vmul.f32 1.0614054, %v5260_v42  ;;  %v5270_v49 = vpop.eup %4470  ;;  %4484 = vpow2.f32 %v2991_v47  ;;  %v2983_v45 = vmul.f32 %v2971_v5, %v2803_v20  ;;  %v2970_v63 = vsub.f32 0.0, %v5249_v39 }
 0xf4d   : > { %v2869_v48 = vadd.f32 -1.4531521, %v2857_v43  ;;  %v2858_v56 = vmul.f32 1.0614054, %v5270_v49  ;;  %v5281_v2 = vpop.eup %4472  ;;  %v2828_v24 = vadd.f32 1.0, %v2816_v3  ;;  %vm2779_vm13 = vcmp.ge.f32.partialorder %v5233_v17, 0.0 }
 0xf4e   : > { %v2871_v50 = vadd.f32 -1.4531521, %v2859_v46  ;;  %v2860_v11 = vmul.f32 1.0614054, %v5281_v2  ;;  %v4475_v13 = vpop.eup %4474  ;;  %v5307_v60 = vmul.f32 0.70710677, %v5288_v4 }
 0xf4f   : > { %v2881_v55 = vmul.f32 %v5251_v38, %v2869_v48  ;;  %v2870_v10 = vadd.f32 -1.4531521, %v2858_v56  ;;  %4486 = vrcp.f32 %v2828_v24  ;;  %vm2778_vm14 = vcmp.ge.f32.partialorder %v5240_v25, 0.0 }
 0xf50   : > { %v2883_v62 = vmul.f32 %v5260_v42, %v2871_v50  ;;  %v2872_v33 = vadd.f32 -1.4531521, %v2860_v11  ;;  %v5297_v43 = vpop.eup %4476  ;;  %v5303_v50 = vmul.f32 0.5, %v5226_v9  ;;  %v2972_v9 = vsub.f32 0.0, %v5275_v54 }
 0xf51   : > { %v2893_v8 = vadd.f32 1.4214138, %v2881_v55  ;;  %v2882_v27 = vmul.f32 %v5270_v49, %v2870_v10  ;;  %v2861_v47 = vmul.f32 1.0614054, %v5297_v43  ;;  %v4479_v48 = vpop.eup %4478  ;;  %4488 = vpow2.f32 %v2997_v31 }
 0xf52   : > { %v2895_v15 = vadd.f32 1.4214138, %v2883_v62  ;;  %v2884_v46 = vmul.f32 %v5281_v2, %v2872_v33  ;;  %4490 = vpow2.f32 %v2995_v0  ;;  %vm2780_vm15 = vcmp.ge.f32.partialorder %v5266_v58, 0.0 }
 0xf53   : > { %v2905_v26 = vmul.f32 %v5251_v38, %v2893_v8  ;;  %v2894_v12 = vadd.f32 1.4214138, %v2882_v27  ;;  %v5309_v55 = vpop.eup %4480  ;;  %v2873_v62 = vadd.f32 -1.4531521, %v2861_v47  ;;  %v3001_v8 = vmul.f32 1.442695, %v2983_v45 }
 0xf54   : > { %v2907_v44 = vmul.f32 %v5260_v42, %v2895_v15  ;;  %v2896_v57 = vadd.f32 1.4214138, %v2884_v46  ;;  %v2863_v3 = vmul.f32 1.0614054, %v5309_v55  ;;  %vm2781_vm0 = vcmp.ge.f32.partialorder %v5307_v60, 0.0 }
 0xf55   : > { %v2917_v21 = vadd.f32 -0.28449672, %v2905_v26  ;;  %v2906_v56 = vmul.f32 %v5270_v49, %v2894_v12  ;;  %v2885_v24 = vmul.f32 %v5297_v43, %v2873_v62  ;;  %v5318_v26 = vpop.eup %4482  ;;  %4492 = vpow2.f32 %v3001_v8 }
 0xf56   : > { %v2919_v59 = vadd.f32 -0.28449672, %v2907_v44  ;;  %v2908_v15 = vmul.f32 %v5281_v2, %v2896_v57  ;;  %v2875_v33 = vadd.f32 -1.4531521, %v2863_v3  ;;  %v2982_v44 = vmul.f32 %v2970_v63, %v5249_v39  ;;  %v4485_v12 = vpop.eup %4484 }
 0xf57   : > { %v2929_v20 = vmul.f32 %v5251_v38, %v2917_v21  ;;  %v2918_v11 = vadd.f32 -0.28449672, %v2906_v56  ;;  %v5322_v21 = vand.u32 2147483647, %v5307_v60  ;;  %v2862_v56 = vmul.f32 1.0614054, %v5318_v26 }
 0xf58   : > { %v2931_v5 = vmul.f32 %v5260_v42, %v2919_v59  ;;  %v2920_v47 = vadd.f32 -0.28449672, %v2908_v15  ;;  %v2897_v59 = vadd.f32 1.4214138, %v2885_v24  ;;  %v2984_v57 = vmul.f32 %v2972_v9, %v5275_v54 }
 0xf59   : > { %v2941_v10 = vadd.f32 0.2548296, %v2929_v20  ;;  %v2930_v46 = vmul.f32 %v5270_v49, %v2918_v11  ;;  %v2887_v20 = vmul.f32 %v5309_v55, %v2875_v33  ;;  %v5332_v3 = vpop.eup %4486  ;;  %v2999_v11 = vmul.f32 1.442695, %v2982_v44 }
 0xf5a   : > { %v2943_v27 = vadd.f32 0.2548296, %v2931_v5  ;;  %v2932_v63 = vmul.f32 %v5281_v2, %v2920_v47  ;;  %v2909_v5 = vmul.f32 %v5297_v43, %v2897_v59  ;;  %v2817_v24 = vmul.f32 0.3275911, %v5322_v21 }
 0xf5b   : > { %v2953_v45 = vmul.f32 %v5251_v38, %v2941_v10  ;;  %v2899_v38 = vadd.f32 1.4214138, %v2887_v20  ;;  %v2874_v10 = vadd.f32 -1.4531521, %v2862_v56  ;;  %v2942_v31 = vadd.f32 0.2548296, %v2930_v46 }
 0xf5c   : > { %v2955_v39 = vmul.f32 %v5260_v42, %v2943_v27  ;;  %v2921_v15 = vadd.f32 -0.28449672, %v2909_v5  ;;  %v2864_v42 = vmul.f32 1.0614054, %v5332_v3  ;;  %v3003_v9 = vmul.f32 1.442695, %v2984_v57 }
 0xf5d   : > { %v3013_v62 = vmul.f32 %v4475_v13, %v2953_v45  ;;  %v2911_v54 = vmul.f32 %v5309_v55, %v2899_v38  ;;  %v2886_v13 = vmul.f32 %v5318_v26, %v2874_v10  ;;  %v2944_v45 = vadd.f32 0.2548296, %v2932_v63  ;;  %v4489_v63 = vpop.eup %4488 }
 0xf5e   : > { %v3015_v33 = vmul.f32 %v4479_v48, %v2955_v39  ;;  %v2933_v0 = vmul.f32 %v5297_v43, %v2921_v15  ;;  %v2876_v44 = vadd.f32 -1.4531521, %v2864_v42  ;;  %v2954_v46 = vmul.f32 %v5270_v49, %v2942_v31 }
 0xf5f   : > { %v3025_v27 = vsub.f32 1.0, %v3013_v62  ;;  %v2923_v47 = vadd.f32 -0.28449672, %v2911_v54  ;;  %v2898_v59 = vadd.f32 1.4214138, %v2886_v13  ;;  %4494 = vpow2.f32 %v2999_v11  ;;  %v4491_v54 = vpop.eup %4490 }
 0xf60   : > { %v2945_v8 = vadd.f32 0.2548296, %v2933_v0  ;;  %v2829_v20 = vadd.f32 1.0, %v2817_v24  ;;  %v2888_v57 = vmul.f32 %v5332_v3, %v2876_v44  ;;  %v3027_v48 = vsub.f32 1.0, %v3015_v33  ;;  %v4493_v42 = vpop.eup %4492 }
 0xf61   : > { %v2935_v56 = vmul.f32 %v5309_v55, %v2923_v47  ;;  %v2910_v5 = vmul.f32 %v5318_v26, %v2898_v59  ;;  %v2956_v62 = vmul.f32 %v5281_v2, %v2944_v45  ;;  %4496 = vpow2.f32 %v3003_v9 }
 0xf62   : > { %v2957_v39 = vmul.f32 %v5297_v43, %v2945_v8  ;;  %v3037_v49 = vmul.f32 %v3025_v27, %v5236_v19  ;;  %v2900_v11 = vadd.f32 1.4214138, %v2888_v57  ;;  %v3014_v31 = vmul.f32 %v4485_v12, %v2954_v46 }
 0xf63   : > { %v2947_v38 = vadd.f32 0.2548296, %v2935_v56  ;;  %v2922_v10 = vadd.f32 -0.28449672, %v2910_v5  ;;  %4498 = vrcp.f32 %v2829_v20  ;;  %v5349_v24 = vadd.f32 %v5210_v51, %v5193_v22 }
 0xf64   : > { %v3017_v15 = vmul.f32 %v4489_v63, %v2957_v39  ;;  %v2791_v2 = vsel %vm2779_vm13, 1.0, %v4571_v18  ;;  %v2912_v19 = vmul.f32 %v5332_v3, %v2900_v11  ;;  %v3039_v12 = vmul.f32 %v3027_v48, %v5246_v30 }
 0xf65   : > { %v2959_v43 = vmul.f32 %v5309_v55, %v2947_v38  ;;  %v2934_v13 = vmul.f32 %v5318_v26, %v2922_v10  ;;  %v3016_v9 = vmul.f32 %v4491_v54, %v2956_v62  ;;  %v3049_v22 = vadd.f32 1.0, %v3037_v49 }
 0xf66   : > { %v3029_v27 = vsub.f32 1.0, %v3017_v15  ;;  %v2924_v45 = vadd.f32 -0.28449672, %v2912_v19  ;;  %v3026_v0 = vsub.f32 1.0, %v3014_v31  ;;  %v5361_v55 = vmul.f32 0.70710677, %v5349_v24 }
 0xf67   : > { %v3019_v51 = vmul.f32 %v4493_v42, %v2959_v43  ;;  %v2946_v33 = vadd.f32 0.2548296, %v2934_v13  ;;  %v5365_v47 = vadd.f32 %v5214_v52, %v5197_v28  ;;  %v2790_v30 = vsel %vm2778_vm14, 1.0, %v4571_v18 }
 0xf68   : > { %v3041_v17 = vmul.f32 %v3029_v27, %v5295_v36  ;;  %v2936_v25 = vmul.f32 %v5332_v3, %v2924_v45  ;;  %v3051_v8 = vadd.f32 1.0, %v3039_v12  ;;  %v3028_v20 = vsub.f32 1.0, %v3016_v9 }
 0xf69   : > { %v3031_v59 = vsub.f32 1.0, %v3019_v51  ;;  %v2958_v44 = vmul.f32 %v5318_v26, %v2946_v33  ;;  %v4495_v46 = vpop.eup %4494  ;;  %v5371_v36 = vand.u32 2147483647, %v5361_v55  ;;  %v3061_v5 = vmul.f32 %v3049_v22, %v5223_v6 }
 0xf6a   : > { %v3053_v56 = vadd.f32 1.0, %v3041_v17  ;;  %v2948_v28 = vadd.f32 0.2548296, %v2936_v25  ;;  %v3038_v62 = vmul.f32 %v3026_v0, %v5254_v41  ;;  %v5378_v63 = vmul.f32 0.70710677, %v5365_v47 }
 0xf6b   : > { %v3043_v57 = vmul.f32 %v3031_v59, %v2791_v2  ;;  %v3018_v48 = vmul.f32 %v4495_v46, %v2958_v44  ;;  %v4497_v52 = vpop.eup %4496  ;;  %v2819_v26 = vmul.f32 0.3275911, %v5371_v36  ;;  %v3063_v11 = vmul.f32 %v3051_v8, %v5229_v14 }
 0xf6c   : > { %v3065_v39 = vmul.f32 %v3053_v56, %v5268_v7  ;;  %v2960_v10 = vmul.f32 %v5332_v3, %v2948_v28  ;;  %v3040_v31 = vmul.f32 %v3028_v20, %v5257_v1  ;;  %v3050_v13 = vadd.f32 1.0, %v3038_v62 }
 0xf6d   : > { %v3055_v49 = vadd.f32 1.0, %v3043_v57  ;;  %v3030_v38 = vsub.f32 1.0, %v3018_v48  ;;  %v5382_v6 = vpop.eup %4498  ;;  %v2831_v15 = vadd.f32 1.0, %v2819_v26  ;;  %v2806_v19 = vand.u32 2147483647, %v5378_v63 }
 0xf6e   : > { %v3138_v41 = vpack.c.bf16 %v3065_v39, %v3061_v5  ;;  %v3020_v2 = vmul.f32 %v4497_v52, %v2960_v10  ;;  %v2865_v43 = vmul.f32 1.0614054, %v5382_v6  ;;  %v5391_v3 = vadd.f32 %v5216_v53, %v5199_v23 }
 0xf6f   : > { %v3067_v7 = vmul.f32 %v3055_v49, %v5279_v61  ;;  %v3042_v54 = vmul.f32 %v3030_v38, %v2790_v30  ;;  %4500 = vrcp.f32 %v2831_v15  ;;  %v3052_v9 = vadd.f32 1.0, %v3040_v31 }
 0xf70   : > { %v3032_v12 = vsub.f32 1.0, %v3020_v2  ;;  %v2877_v1 = vadd.f32 -1.4531521, %v2865_v43  ;;  %v2792_v61 = vsel %vm2780_vm15, 1.0, %v4571_v18  ;;  %v2973_v27 = vsub.f32 0.0, %v5322_v21 }
 0xf71   : > { %v3140_v42 = vpack.c.bf16 %v3067_v7, %v3063_v11  ;;  %v3054_v14 = vadd.f32 1.0, %v3042_v54  ;;  %v2818_v22 = vmul.f32 0.3275911, %v2806_v19  ;;  %v5400_v23 = vmul.f32 0.70710677, %v5391_v3 }
 0xf72   : > { %v3044_v33 = vmul.f32 %v3032_v12, %v2792_v61  ;;  %v2889_v45 = vmul.f32 %v5382_v6, %v2877_v1  ;;  %v3062_v53 = vmul.f32 %v3050_v13, %v5231_v16  ;;  %v2752_v0 = vmul.f32 0.5, %v5205_v40 }
 0xf73   : > { %v3066_v51 = vmul.f32 %v3054_v14, %v5303_v50  ;;  %v2830_v17 = vadd.f32 1.0, %v2818_v22  ;;  %v2756_v59 = vmul.f32 0.5, %v5243_v29  ;;  %v2808_v44 = vand.u32 2147483647, %v5400_v23 }
 0xf74   : > { %v3056_v58 = vadd.f32 1.0, %v3044_v33  ;;  %v2901_v30 = vadd.f32 1.4214138, %v2889_v45  ;;  %v2985_v25 = vmul.f32 %v2973_v27, %v5322_v21  ;;  %v3064_v46 = vmul.f32 %v3052_v9, %v2752_v0 }
 0xf75   : > { %4502 = vrcp.f32 %v2830_v17  ;;  %v3139_v50 = vpack.c.bf16 %v3066_v51, %v3062_v53  ;;  %v2820_v56 = vmul.f32 0.3275911, %v2808_v44  ;;  %v2975_v16 = vsub.f32 0.0, %v5371_v36 }
 0xf76   : > { %v3068_v8 = vmul.f32 %v3056_v58, %v2756_v59  ;;  %v2913_v20 = vmul.f32 %v5382_v6, %v2901_v30  ;;  %v3005_v48 = vmul.f32 1.442695, %v2985_v25  ;;  %v2974_v52 = vsub.f32 0.0, %v2806_v19 }
 0xf77   : > { %3376 = vmatprep.mubr.bf16.mxu0 %v3139_v50  ;;  %v2832_v40 = vadd.f32 1.0, %v2820_v56  ;;  %v2987_v21 = vmul.f32 %v2975_v16, %v5371_v36  ;;  %vm2783_vm1 = vcmp.ge.f32.partialorder %v5361_v55, 0.0  ;;  %vm2782_vm2 = vcmp.ge.f32.partialorder %v5378_v63, 0.0 }
 0xf78   : > { %v3141_v5 = vpack.c.bf16 %v3068_v8, %v3064_v46  ;;  %3377 = vmatmul.mubr.bf16.vlgmr.msra.gmra.mrb[36].mxu0 %v3138_v41  ;;  %v2925_v57 = vadd.f32 -0.28449672, %v2913_v20  ;;  %v2986_v10 = vmul.f32 %v2974_v52, %v2806_v19  ;;  %v2976_v41 = vsub.f32 0.0, %v2808_v44 }
 0xf79   : > { %v4501_v29 = vpop.eup %4500  ;;  %4504 = vrcp.f32 %v2832_v40  ;;  %v3009_v38 = vmul.f32 1.442695, %v2987_v21  ;;  %v2793_v46 = vsel %vm2781_vm0, 1.0, %v4571_v18  ;;  %v2795_v60 = vsel %vm2783_vm1, 1.0, %v4571_v18 }
 0xf7a   : > { %v2867_v28 = vmul.f32 1.0614054, %v4501_v29  ;;  %3424 = vmatprep.mubr.bf16.mxu1 %v3141_v5  ;;  %v2937_v39 = vmul.f32 %v5382_v6, %v2925_v57  ;;  %4506 = vpow2.f32 %v3005_v48  ;;  %v3007_v2 = vmul.f32 1.442695, %v2986_v10 }
 0xf7b   : > { %3425 = vmatmul.mubr.bf16.vlgmr.msra.gmra.mrb[40].mxu1 %v3140_v42  ;;  %4508 = vpow2.f32 %v3009_v38  ;;  %v2988_v42 = vmul.f32 %v2976_v41, %v2808_v44  ;;  %v2794_v48 = vsel %vm2782_vm2, 1.0, %v4571_v18  ;;  %vm2784_vm3 = vcmp.ge.f32.partialorder %v5400_v23, 0.0 }
 0xf7c   : > { %v2879_v62 = vadd.f32 -1.4531521, %v2867_v28  ;;  %v2949_v15 = vadd.f32 0.2548296, %v2937_v39  ;;  %4510 = vpow2.f32 %v3007_v2  ;;  %v2760_v2 = vmul.f32 0.5, %v5391_v3 }
 0xf7d   : > { %v3011_v51 = vmul.f32 1.442695, %v2988_v42  ;;  %v3898_v42 = vld [vmem:[%s907_s27] ss:$0 sm:$0xff] }
 0xf7e   : > { %v2891_v26 = vmul.f32 %v4501_v29, %v2879_v62  ;;  %v2961_v14 = vmul.f32 %v5382_v6, %v2949_v15 }
 0xf7f   : > { %v4503_v49 = vpop.eup %4502  ;;  %4512 = vpow2.f32 %v3011_v51 }
 0xf80   : > { %v2903_v11 = vadd.f32 1.4214138, %v2891_v26  ;;  %v2866_v31 = vmul.f32 1.0614054, %v4503_v49  ;;  %v2757_v26 = vmul.f32 0.5, %v5288_v4 }
 0xf82   : > { %v2915_v7 = vmul.f32 %v4501_v29, %v2903_v11  ;;  %v2878_v54 = vadd.f32 -1.4531521, %v2866_v31  ;;  %v2796_v11 = vsel %vm2784_vm3, 1.0, %v4571_v18 }
 0xf83   : > { %v4505_v43 = vpop.eup %4504 }
 0xf84   : > { %v2927_v36 = vadd.f32 -0.28449672, %v2915_v7  ;;  %v2890_v13 = vmul.f32 %v4503_v49, %v2878_v54  ;;  %v2868_v12 = vmul.f32 1.0614054, %v4505_v43  ;;  %v4507_v19 = vpop.eup %4506  ;;  %v2759_v7 = vmul.f32 0.5, %v5349_v24 }
 0xf85   : > { %v3021_v33 = vmul.f32 %v4507_v19, %v2961_v14  ;;  %v4509_v58 = vpop.eup %4508 }
 0xf86   : > { %v2939_v1 = vmul.f32 %v4501_v29, %v2927_v36  ;;  %v2902_v9 = vadd.f32 1.4214138, %v2890_v13  ;;  %v2880_v61 = vadd.f32 -1.4531521, %v2868_v12  ;;  %v4511_v20 = vpop.eup %4510 }
 0xf87   : > { %v3033_v6 = vsub.f32 1.0, %v3021_v33 }
 0xf88   : > { %v2951_v27 = vadd.f32 0.2548296, %v2939_v1  ;;  %v2914_v22 = vmul.f32 %v4503_v49, %v2902_v9  ;;  %v2892_v45 = vmul.f32 %v4505_v43, %v2880_v61 }
 0xf89   : > { %v3045_v56 = vmul.f32 %v3033_v6, %v2793_v46  ;;  %v4513_v52 = vpop.eup %4512 }
 0xf8a   : > { %v2963_v53 = vmul.f32 %v4501_v29, %v2951_v27  ;;  %v2926_v0 = vadd.f32 -0.28449672, %v2914_v22  ;;  %v2904_v17 = vadd.f32 1.4214138, %v2892_v45 }
 0xf8b   : > { %v3057_v21 = vadd.f32 1.0, %v3045_v56 }
 0xf8c   : > { %v2938_v59 = vmul.f32 %v4503_v49, %v2926_v0  ;;  %v2916_v30 = vmul.f32 %v4505_v43, %v2904_v17  ;;  %v3023_v44 = vmul.f32 %v4509_v58, %v2963_v53 }
 0xf8d   : > { %v3069_v10 = vmul.f32 %v3057_v21, %v2757_v26  ;;  %v4521_v26 = vld [vmem:[%s5565_s9 + $0x28] sm:$0xff] (!%p3931_p8)  }
 0xf8e   : > { %v2950_v25 = vadd.f32 0.2548296, %v2938_v59  ;;  %v2928_v50 = vadd.f32 -0.28449672, %v2916_v30  ;;  %v3035_v40 = vsub.f32 1.0, %v3023_v44 }
 0xf90   : > { %v2962_v8 = vmul.f32 %v4503_v49, %v2950_v25  ;;  %v2940_v16 = vmul.f32 %v4505_v43, %v2928_v50  ;;  %v3047_v62 = vmul.f32 %v3035_v40, %v2795_v60  ;;  %v2758_v49 = vmul.f32 0.5, %v5365_v47 }
 0xf92   : > { %v3022_v5 = vmul.f32 %v4511_v20, %v2962_v8  ;;  %v2952_v29 = vadd.f32 0.2548296, %v2940_v16  ;;  %v3059_v41 = vadd.f32 1.0, %v3047_v62  ;;  %v4519_v62 = vld [vmem:[%s5565_s9 + $0x18] sm:$0xff] (!%p3931_p8)  }
 0xf94   : > { %v3034_v57 = vsub.f32 1.0, %v3022_v5  ;;  %v2964_v28 = vmul.f32 %v4505_v43, %v2952_v29  ;;  %v3142_v43 = vpack.c.bf16 %v3069_v10, %v3069_v10  ;;  %v3071_v23 = vmul.f32 %v3059_v41, %v2759_v7 }
 0xf95   : > { %v4572_v29 = vmov (!%p3931_p8), 0.0  }
 0xf96   : > { %v3046_v39 = vmul.f32 %v3034_v57, %v2794_v48  ;;  %v3024_v55 = vmul.f32 %v4513_v52, %v2964_v28  ;;  %v3144_v13 = vpack.c.bf16 %v3071_v23, %v3071_v23  ;;  %4199 = vmatprep.subr.bf16.mxu0 (!%p3931_p8), %v4572_v29  ;;  %v4517_v57 = vld [vmem:[%s5565_s9 + $0x8] sm:$0xff] (!%p3931_p8)   ;;  %v4518_v52 = vld [vmem:[%s5565_s9 + $0x10] sm:$0xff] (!%p3931_p8)  }
 0xf98   : > { %v3058_v63 = vadd.f32 1.0, %v3046_v39  ;;  %v3036_v38 = vsub.f32 1.0, %v3024_v55  ;;  %v4520_v39 = vld [vmem:[%s5565_s9 + $0x20] sm:$0xff] (!%p3931_p8)   ;;  %v4522_v55 = vld [vmem:[%s5565_s9 + $0x30] sm:$0xff] (!%p3931_p8)  }
 0xf9a   : > { %v3070_v31 = vmul.f32 %v3058_v63, %v2758_v49  ;;  %v3048_v15 = vmul.f32 %v3036_v38, %v2796_v11  ;;  %v4523_v49 = vld [vmem:[%s5565_s9 + $0x38] sm:$0xff] (!%p3931_p8)  }
 0xf9c   : > { %v3143_v54 = vpack.c.bf16 %v3070_v31, %v3070_v31  ;;  %v3060_v4 = vadd.f32 1.0, %v3048_v15  ;;  %v3450_v31 = vld [vmem:[%s5566_s20] sm:$0x1] (!%p3931_p8) }
 0xf9d   : > { %v3451_v15 = vld [vmem:[%s5567_s1] sm:$0x1] (!%p3931_p8) }
 0xf9e   : > { %3384 = vmatprep.mubr.bf16.mxu0 %v3143_v54  ;;  %v3072_v36 = vmul.f32 %v3060_v4, %v2760_v2 }
 0xf9f   : > { %3385 = vmatmul.mubr.bf16.gmra.mrb[40].mxu0 %v3142_v43 }
 0xfa0   : > { %v3145_v47 = vpack.c.bf16 %v3072_v36, %v3072_v36  ;;  %4215 = vmatprep.mubr.msk.bf16.mxu0 (!%p3931_p8), %vm4573_vm5, %v4572_v29 }
 0xfa2   : > { %3432 = vmatprep.mubr.bf16.mxu1 %v3145_v47 }
 0xfa3   : > { %3433 = vmatmul.mubr.bf16.gmra.mrb[44].mxu1 %v3144_v13 }
0x104b   : > { %v4024_v18 = vpop.f32.mrb[36].mxu0 }
0x104c   : > { %v4025_v24 = vpop.f32.mrb[37].mxu0 }
0x104d   : > { %v4026_v14 = vadd.f32 %v4025_v24, %v4024_v18  ;;  %v4027_v12 = vpop.f32.mrb[38].mxu0 }
0x104e   : > { %v4052_v3 = vpop.f32.mrb[40].mxu1  ;;  %v4028_v1 = vpop.f32.mrb[39].mxu0 }
0x104f   : > { %v3379_v9 = vadd.f32 %v4026_v14, %v3898_v42  ;;  %v4053_v61 = vpop.f32.mrb[41].mxu1  ;;  %v4029_v19 = vadd.f32 %v4028_v1, %v4027_v12 }
0x1050   : > { %v4054_v27 = vadd.f32 %v4053_v61, %v4052_v3  ;;  %v4055_v22 = vpop.f32.mrb[42].mxu1 }
0x1051   : > { %v3382_v51 = vadd.f32 %v4029_v19, %v3898_v42  ;;  %v4056_v33 = vpop.f32.mrb[43].mxu1 }
0x1052   : > { %v3427_v45 = vadd.f32 %v4054_v27, %v3379_v9  ;;  %v4057_v53 = vadd.f32 %v4056_v33, %v4055_v22 }
0x1054   : > { %v3440_v0 = vadd.f32 %v3427_v45, %v5082_v32  ;;  %v3430_v17 = vadd.f32 %v4057_v53, %v3382_v51 }
0x1056   : > { %3443 = vst [vmem:[#allocation2] sm:$0xff] %v3440_v0  ;;  %v3441_v59 = vadd.f32 %v3430_v17, %v5086_v35  ;;  %v3453_v32 = vsel (!%p3931_p8), %vm3452_vm4, %v3440_v0, 0.0  ;;  %v4516_v35 = vld [vmem:[%s5564_s30] sm:$0xff] (!%p3931_p8)   ;;  %s5568_s30 = sld [smem:[#allocation26_spill]] (!%p3931_p8) }
0x1057   : > { %3454 = vadd.xlane.f32.xlu0 (!%p3931_p8), %v3453_v32  ;;  %4200 = vmatpush3.bf16.msra.mxu0 (!%p3931_p8), %v4516_v35 }
0x1058   : > { %3444 = vst [vmem:[#allocation2 + $0x8] sm:$0xff] %v3441_v59  ;;  %4201 = vmatprep.subr.bf16.mxu0 (!%p3931_p8), %v4572_v29 }
0x105b   : > { %4202 = vmatpush3.bf16.msra.mxu0 (!%p3931_p8), %v4517_v57 }
0x105c   : > { %4203 = vmatprep.subr.bf16.mxu0 (!%p3931_p8), %v4572_v29  ;;  %v3484_v4 = vld [vmem:[%s5568_s30] sm:$0x1] (!%p3931_p8) }
0x105f   : > { %4204 = vmatpush3.bf16.msra.mxu0 (!%p3931_p8), %v4518_v52 }
0x1060   : > { %4205 = vmatprep.subr.bf16.mxu0 (!%p3931_p8), %v4572_v29 }
0x1063   : > { %4206 = vmatpush3.bf16.msra.mxu0 (!%p3931_p8), %v4519_v62 }
0x1064   : > { %4207 = vmatprep.subr.bf16.mxu0 (!%p3931_p8), %v4572_v29 }
0x1067   : > { %4208 = vmatpush3.bf16.msra.mxu0 (!%p3931_p8), %v4520_v39 }
0x1068   : > { %4209 = vmatprep.subr.bf16.mxu0 (!%p3931_p8), %v4572_v29 }
0x106b   : > { %4210 = vmatpush3.bf16.msra.mxu0 (!%p3931_p8), %v4521_v26 }
0x106c   : > { %4211 = vmatprep.subr.bf16.mxu0 (!%p3931_p8), %v4572_v29 }
0x106f   : > { %4212 = vmatpush3.bf16.msra.mxu0 (!%p3931_p8), %v4522_v55 }
0x1070   : > { %4213 = vmatprep.subr.bf16.mxu0 (!%p3931_p8), %v4572_v29 }
0x1072   : > { %v4030_v58 = vpop.f32.mrb[40].mxu0 }
0x1073   : > { %v4031_v6 = vpop.f32.mrb[41].mxu0  ;;  %4214 = vmatpush3.bf16.msra.mxu0 (!%p3931_p8), %v4523_v49 }
0x1074   : > { %v4032_v30 = vadd.f32 %v4031_v6, %v4030_v58  ;;  %v4033_v44 = vpop.f32.mrb[42].mxu0 }
0x1075   : > { %v4034_v25 = vpop.f32.mrb[43].mxu0 }
0x1076   : > { %v4058_v50 = vpop.f32.mrb[44].mxu1  ;;  %v3387_v46 = vadd.f32 %v4032_v30, %v3898_v42 }
0x1077   : > { %v4059_v8 = vpop.f32.mrb[45].mxu1 }
0x1078   : > { %v4060_v20 = vadd.f32 %v4059_v8, %v4058_v50  ;;  %v4061_v56 = vpop.f32.mrb[46].mxu1  ;;  %3449 = sbr.rel (%p3931_p8) target bundleno = 4714 (0x126a), region = 116 }
0x1079   : > { %v4062_v16 = vpop.f32.mrb[47].mxu1 }
0x107a   : > { %v3435_v40 = vadd.f32 %v4060_v20, %v3387_v46 }
0x107c   : > { %v3442_v5 = vadd.f32 %v3435_v40, %v5089_v37 }
0x107e   : > { %3445 = vst [vmem:[#allocation2 + $0x10] sm:$0xff] %v3442_v5 }
0x10e4   : > { %v3455_v37 = vpop.xlane.xlu0 %3454 }
0x10e5   : > { %v3456_v60 = vmul.f32 0.0078125, %v3455_v37 }
0x10e7   : > { %v3457_v48 = vsub.f32 %v3440_v0, %v3456_v60 }
0x10e9   : > { %v3458_v28 = vmul.f32 %v3457_v48, %v3457_v48 }
0x10eb   : > { %v3459_v21 = vsel %vm3452_vm4, %v3458_v28, 0.0 }
0x10ec   : > { %3460 = vadd.xlane.f32.xlu0 %v3459_v21 }
0x1179   : > { %v3461_v63 = vpop.xlane.xlu0 %3460 }
0x117a   : > { %v3462_v38 = vmul.f32 0.0078125, %v3461_v63 }
0x117c   : > { %v3463_v10 = vadd.f32 1e-06, %v3462_v38 }
0x117e   : > { %4524 = vrsqrt.f32 %v3463_v10 }
0x1188   : > { %v4525_v11 = vpop.eup %4524 }
0x1189   : > { %v3465_v41 = vmul.f32 %v4525_v11, %v3457_v48 }
0x118b   : > { %v3466_v7 = vmul.f32 %v3465_v41, %v3450_v31 }
0x118d   : > { %v3467_v54 = vadd.f32 %v3466_v7, %v3451_v15 }
0x118f   : > { %v3485_v2 = vpack.c.bf16 %v3467_v54, %v3467_v54 }
0x1191   : > { %4216 = vmatmul.mubr.bf16.vlgmr.msra.gmra.mrb[0].mxu0 %v3485_v2 }
0x1264   : > { %v3568_v43 = vpop.f32.mrb[0].mxu0 }
0x1265   : > { %v3569_v23 = vadd.f32 %v3568_v43, %v3484_v4  ;;  %v4217_v36 = vpop.f32.mrb[1].mxu0 }
0x1266   : > { %v3571_v47 = vpop.f32.mrb[2].mxu0 }
0x1267   : > { %v3577_v13 = vrot.slane %v3569_v23, %v4894_v34  ;;  %v4218_v18 = vpop.f32.mrb[3].mxu0 }
0x1269   : > { %3578 = vst [vmem:[%s4804_s8] sm:$0xff] %v3577_v13 }
0x126a PF: > { %s5569_s10 = sld [smem:[#allocation6_spill]]  ;;  %s5570_s3 = sld [smem:[#allocation4_spill]] }
0x126b   : > { %s5571_s28 = sld [smem:[#allocation5_spill]]  ;;  %s5572_s29 = sld [smem:[#allocation7_spill]] }
0x126c   : > { %s5573_s30 = sld [smem:[#allocation8_spill]] }
0x1270   : > { %s32_s4 = sadd.s32 1, %s5569_s10  }
0x1271   : > { %p29_p9 = scmp.ge.s32.totalorder %s32_s4, 6  }
0x1273   :  { %31 = sbr.rel (!%p29_p9) target bundleno = 20 (0x14), region = 185 }

</bundles_post_ra>
